<compile_context>
chip_gen: v5e
topology: v5e:2x2
jax: 0.10.0
libtpu: 0.0.40
codegen_flags: <defaults>
</compile_context>

<pallas_src>
import functools

import jax
import jax.numpy as jnp
from jax import lax
from jax.experimental import pallas as pl
from jax.experimental.pallas import tpu as pltpu


def _round_up(x, m):
    return (x + m - 1) // m * m


def _prelu(y, alpha):
    return jnp.where(y >= 0, y, alpha * y)


def _sparsemax_rows(scores, n_bisect, n_refine):
    """Exact sparsemax along the last axis of a (R, NP) f32 array.

    After max-subtraction the row max is 0 and tau* lies in [-1, 0].  A short
    bisection of f(tau) = sum(relu(z - tau)) - 1 gives a lower bound lo <= tau*;
    the closed-form refinement tau <- (sum_{z>tau} z - 1)/|{z>tau}| is monotone
    nondecreasing and bounded by tau*, and is exact once the support is correct.
    """
    z = scores - jnp.max(scores, axis=-1, keepdims=True)          # row max == 0
    lo = jnp.full(z.shape[:-1] + (1,), -1.0, jnp.float32)
    hi = jnp.zeros_like(lo)

    def body(_, carry):
        lo, hi = carry
        mid = 0.5 * (lo + hi)
        f = jnp.sum(jnp.maximum(z - mid, 0.0), axis=-1, keepdims=True) - 1.0
        go_up = f >= 0.0
        return jnp.where(go_up, mid, lo), jnp.where(go_up, hi, mid)

    lo, _ = lax.fori_loop(0, n_bisect, body, (lo, hi), unroll=True)
    tau = lo                                                       # tau <= tau*
    for _ in range(n_refine):                                      # 1-2 exact rounds
        support = (z > tau).astype(jnp.float32)
        k = jnp.sum(support, axis=-1, keepdims=True)               # k >= 1 always
        tau = (jnp.sum(z * support, axis=-1, keepdims=True) - 1.0) / k
    return jnp.maximum(z - tau, 0.0)


# ------------------- phase 1: per-batch e2^T and x_assembly -------------------

def _setup_kernel(alpha_ref, x_ref, w2_ref, b2_ref, wa_ref, ba_ref,
                  e2t_ref, xa_ref, *, mxu_dtype):
    x = x_ref[0].astype(mxu_dtype)                                 # (Tk, CP)
    e2 = jnp.dot(x, w2_ref[...], preferred_element_type=jnp.float32) + b2_ref[...]
    e2 = _prelu(e2, alpha_ref[1])                                  # (Tk, CrP) f32
    e2t_ref[0] = e2.astype(mxu_dtype).T                            # cast BEFORE transpose
    xa = jnp.dot(x, wa_ref[...], preferred_element_type=jnp.float32) + ba_ref[...]
    xa_ref[0] = _prelu(xa, alpha_ref[2]).astype(mxu_dtype)         # (Tk, CP)


# ------------------- phase 2: attention over query-row tiles -------------------

def _attn_kernel(alpha_ref, x_ref, w1_ref, b1_ref, e2t_ref, xa_ref, o_ref, *,
                 res_scale, n_valid, n_total, n_bisect, n_refine, mxu_dtype):
    x_tile = x_ref[0]                                              # (Tq, CP)
    e1 = jnp.dot(x_tile.astype(mxu_dtype), w1_ref[...],
                 preferred_element_type=jnp.float32) + b1_ref[...]
    e1 = _prelu(e1, alpha_ref[0])                                  # (Tq, CrP) f32

    # Canonical (Tq, CrP) x (CrP, NP) MXU contraction (e2 pre-transposed, bf16).
    score = jnp.dot(e1.astype(mxu_dtype), e2t_ref[0],
                    preferred_element_type=jnp.float32)            # (Tq, NP) f32
    if n_total != n_valid:   # static: mask padded key columns out of the support
        col = lax.broadcasted_iota(jnp.int32, score.shape, 1)
        score = jnp.where(col < n_valid, score, -1.0e30)

    p = _sparsemax_rows(score, n_bisect, n_refine)                 # (Tq, NP) f32

    out = jnp.dot(p.astype(mxu_dtype), xa_ref[0],
                  preferred_element_type=jnp.float32)              # (Tq, CP) f32
    o_ref[0] = (res_scale * out + x_tile.astype(jnp.float32)).astype(o_ref.dtype)


# ------------------------------- host wrapper ---------------------------------

def _vmem_capacity_bytes():
    try:
        info = pltpu.get_tpu_info()
        cap = getattr(info, "vmem_capacity_bytes", None)
        if cap:
            return int(cap)
    except Exception:
        pass
    return 64 * 1024 * 1024          # conservative fallback (v7x per-TC VMEM)


def _pick_tq(NP, CP, CrP, vmem_limit, x_bytes, mxu_bytes, block_q):
    cands = [c for c in (512, 256, 128, 64, 32, 16, 8)
             if NP % c == 0 and (block_q is None or c <= block_q)]
    if not cands:
        cands = [8]
    # fixed per-batch VMEM: e2t + xa streamed blocks (double-buffered) + weights
    fixed = 2 * (CrP * NP + NP * CP) * mxu_bytes + 2 * (CP * CrP * mxu_bytes + CrP * 4)
    # per query-row bytes: x/out tiles (double-buffered) + f32 sparsemax working set
    per_row = 4 * CP * x_bytes + 2 * CP * 4 + 6 * NP * 4
    budget = int(0.7 * vmem_limit)
    for c in cands:
        if fixed + c * per_row <= budget:
            return c
    return cands[-1]


def hspa_forward(x, params, *, res_scale=1.0, block_q=None, n_bisect=12, n_refine=2,
                 mxu_dtype=jnp.bfloat16):
    B, N, C = x.shape
    w1, b1, a1, w2, b2, a2, wa, ba, aa = params
    Cr = w1.shape[1]

    CP = _round_up(C, 128)
    CrP = _round_up(Cr, 128)
    NP = _round_up(N, 128)

    def pad2(a, r, c):
        return jnp.pad(a, ((0, r - a.shape[0]), (0, c - a.shape[1])))

    # Zero channel padding is exactly preserved end-to-end; padded key rows (N..NP)
    # are neutralised by the score mask inside the attention kernel.
    xp = jnp.pad(x, ((0, 0), (0, NP - N), (0, CP - C)))
    w1c = pad2(w1, CP, CrP).astype(mxu_dtype)        # pre-cast weights (perf review)
    w2c = pad2(w2, CP, CrP).astype(mxu_dtype)
    wac = pad2(wa, CP, CP).astype(mxu_dtype)
    b1p = pad2(b1, 1, CrP).astype(jnp.float32)
    b2p = pad2(b2, 1, CrP).astype(jnp.float32)
    bap = pad2(ba, 1, CP).astype(jnp.float32)
    alphas = jnp.stack([a1.reshape(()), a2.reshape(()), aa.reshape(())]
                       ).astype(jnp.float32)          # PReLU slopes -> SMEM

    vmem_limit = int(_vmem_capacity_bytes() * 0.85)   # per-generation, with headroom
    mxu_bytes = jnp.dtype(mxu_dtype).itemsize
    tq = _pick_tq(NP, CP, CrP, vmem_limit, x.dtype.itemsize, mxu_bytes, block_q)
    n_q = NP // tq
    TK = 128                                          # setup tile (NP % 128 == 0)

    def run(single_buffer):
        kw = {"pipeline_mode": pl.Buffered(1)} if single_buffer else {}

        def const2(arr):                              # grid-constant 2D input
            return pl.BlockSpec(arr.shape, lambda b, k: (0, 0), **kw)

        # --- phase 1: per-batch e2^T (CrP, NP) and x_assembly (NP, CP), bf16 ---
        e2t, xa = pl.pallas_call(
            functools.partial(_setup_kernel, mxu_dtype=mxu_dtype),
            out_shape=(jax.ShapeDtypeStruct((B, CrP, NP), mxu_dtype),
                       jax.ShapeDtypeStruct((B, NP, CP), mxu_dtype)),
            grid=(B, NP // TK),
            in_specs=[
                pl.BlockSpec(memory_space=pltpu.MemorySpace.SMEM),   # PReLU slopes
                pl.BlockSpec((1, TK, CP), lambda b, k: (b, k, 0)),   # x tile
                const2(w2c), const2(b2p), const2(wac), const2(bap),
            ],
            out_specs=(pl.BlockSpec((1, CrP, TK), lambda b, k: (b, 0, k)),
                       pl.BlockSpec((1, TK, CP), lambda b, k: (b, k, 0))),
            compiler_params=pltpu.CompilerParams(
                dimension_semantics=("parallel", "parallel"),
                vmem_limit_bytes=vmem_limit),
        )(alphas, xp, w2c, b2p, wac, bap)

        # --- phase 2: uniform, fully-parallel attention over query-row tiles ---
        out_p = pl.pallas_call(
            functools.partial(_attn_kernel, res_scale=res_scale, n_valid=N,
                              n_total=NP, n_bisect=n_bisect, n_refine=n_refine,
                              mxu_dtype=mxu_dtype),
            out_shape=jax.ShapeDtypeStruct((B, NP, CP), x.dtype),
            grid=(B, n_q),
            in_specs=[
                pl.BlockSpec(memory_space=pltpu.MemorySpace.SMEM),   # PReLU slopes
                pl.BlockSpec((1, tq, CP), lambda b, q: (b, q, 0)),   # x tile
                const2(w1c), const2(b1p),
                pl.BlockSpec((1, CrP, NP), lambda b, q: (b, 0, 0)),  # e2^T per batch
                pl.BlockSpec((1, NP, CP), lambda b, q: (b, 0, 0)),   # x_assembly
            ],
            out_specs=pl.BlockSpec((1, tq, CP), lambda b, q: (b, q, 0)),
            compiler_params=pltpu.CompilerParams(
                dimension_semantics=("parallel", "parallel"),
                vmem_limit_bytes=vmem_limit),
        )(alphas, xp, w1c, b1p, e2t, xa)
        return jax.block_until_ready(out_p)

    try:
        out_p = run(True)      # single-buffer grid-constant weight/bias inputs
    except Exception:
        out_p = run(False)     # fallback if pipeline_mode=Buffered(1) is unsupported

    if NP == N and CP == C:
        return out_p           # no extra HBM copy when nothing was padded
    return out_p[:, :N, :C]


# ------------- pure-JAX reference (mirrors the PyTorch sort-based algorithm) -------------

def _sparsemax_ref(s):
    z = s - jnp.max(s, axis=-1, keepdims=True)
    k = -jnp.sort(-z, axis=-1)                                # descending sort
    cum = jnp.cumsum(k, axis=-1) - 1.0
    ar = jnp.arange(1, z.shape[-1] + 1, dtype=z.dtype)
    support = ar * k > cum
    kk = jnp.sum(support, axis=-1, keepdims=True)
    tau = jnp.take_along_axis(cum, kk - 1, axis=-1) / kk.astype(z.dtype)
    return jnp.maximum(z - tau, 0.0)


def hspa_ref(x, params, *, res_scale=1.0, mxu_dtype=jnp.float32):
    """Sort-based sparsemax reference; with mxu_dtype=bf16 it mirrors the kernel's
    matmul operand casts (f32 accumulation) so the comparison is apples-to-apples."""
    w1, b1, a1, w2, b2, a2, wa, ba, aa = params
    xm = x.astype(mxu_dtype)

    def branch(w, b, a):
        y = jnp.einsum('bnc,cd->bnd', xm, w.astype(mxu_dtype),
                       preferred_element_type=jnp.float32) + b
        return jnp.where(y >= 0, y, a[0, 0] * y)

    e1 = branch(w1, b1, a1)
    e2 = branch(w2, b2, a2)
    xa = branch(wa, ba, aa)
    score = jnp.einsum('bpc,bqc->bpq', e1.astype(mxu_dtype), e2.astype(mxu_dtype),
                       preferred_element_type=jnp.float32)
    p = _sparsemax_ref(score)
    out = jnp.einsum('bpq,bqc->bpc', p.astype(mxu_dtype), xa.astype(mxu_dtype),
                     preferred_element_type=jnp.float32)
    return res_scale * out + x.astype(jnp.float32)


if __name__ == "__main__":
    # Small config consistent with the module: channel=8, reduction=2 -> Cr=4,
    # H=W=8 -> N=64 tokens (padded to NP=128, exercising the key mask) and
    # block_q=64 so the query-row tiling runs with grid = (2, 2).
    B, C, H, W = 2, 8, 8, 8
    N = H * W
    reduction = 2
    Cr = C // reduction

    key = jax.random.PRNGKey(0)
    ks = jax.random.split(key, 7)
    x = jax.random.normal(ks[0], (B, N, C), jnp.float32)

    # 1x1-conv weights stored pre-transposed as (Cin, Cout); biases as (1, Cout);
    # PReLU slopes (1, 1) with the PyTorch default init 0.25.
    w1 = 0.3 * jax.random.normal(ks[1], (C, Cr), jnp.float32)
    b1 = 0.1 * jax.random.normal(ks[2], (1, Cr), jnp.float32)
    a1 = jnp.full((1, 1), 0.25, jnp.float32)
    w2 = 0.3 * jax.random.normal(ks[3], (C, Cr), jnp.float32)
    b2 = 0.1 * jax.random.normal(ks[4], (1, Cr), jnp.float32)
    a2 = jnp.full((1, 1), 0.25, jnp.float32)
    wa = 0.3 * jax.random.normal(ks[5], (C, C), jnp.float32)
    ba = 0.1 * jax.random.normal(ks[6], (1, C), jnp.float32)
    aa = jnp.full((1, 1), 0.25, jnp.float32)
    params = (w1, b1, a1, w2, b2, a2, wa, ba, aa)

    out = jax.block_until_ready(
        hspa_forward(x, params, res_scale=1.0, block_q=64, mxu_dtype=jnp.bfloat16))
    ref = hspa_ref(x, params, res_scale=1.0, mxu_dtype=jnp.bfloat16)

    assert out.shape == (B, N, C)
    diff = jnp.abs(out - ref)
    max_err = float(jnp.max(diff))
    mean_err = float(jnp.mean(diff))
    # Thresholds tolerate isolated bf16 rounding / accumulation-order / sparsemax-tie
    # differences between Mosaic and XLA, while still catching any real bug.
    if max_err < 1e-1 and mean_err < 5e-3:
        print("KERNEL_OK")
    else:
        print(f"MISMATCH max_abs_err={max_err} mean_abs_err={mean_err}")
</pallas_src>

<mosaic_0001>
module attributes {stable_mosaic.version = 11 : i64} {
  func.func @_setup_kernel(%arg0: i32, %arg1: i32, %arg2: memref<3xf32, #tpu.memory_space<smem>>, %arg3: memref<1x128x128xf32, #tpu.memory_space<vmem>>, %arg4: memref<128x128xbf16, #tpu.memory_space<vmem>>, %arg5: memref<1x128xf32, #tpu.memory_space<vmem>>, %arg6: memref<128x128xbf16, #tpu.memory_space<vmem>>, %arg7: memref<1x128xf32, #tpu.memory_space<vmem>>, %arg8: memref<1x128x128xbf16, #tpu.memory_space<vmem>>, %arg9: memref<1x128x128xbf16, #tpu.memory_space<vmem>>) attributes {dimension_semantics = [#tpu.dimension_semantics<parallel>, #tpu.dimension_semantics<parallel>], iteration_bounds = array<i64: 2, 1>, scalar_prefetch = 0 : i64, scratch_operands = 0 : i64, tpu.core_type = #tpu.core_type<tc>, window_params = [{transform_indices = @transform_0, window_bounds = array<i64: 3>}, {transform_indices = @transform_1, window_bounds = array<i64: 1, 128, 128>}, {pipeline_mode = #tpu.pipeline_mode<synchronous>, transform_indices = @transform_2, window_bounds = array<i64: 128, 128>}, {pipeline_mode = #tpu.pipeline_mode<synchronous>, transform_indices = @transform_3, window_bounds = array<i64: 1, 128>}, {pipeline_mode = #tpu.pipeline_mode<synchronous>, transform_indices = @transform_4, window_bounds = array<i64: 128, 128>}, {pipeline_mode = #tpu.pipeline_mode<synchronous>, transform_indices = @transform_5, window_bounds = array<i64: 1, 128>}, {transform_indices = @transform_6, window_bounds = array<i64: 1, 128, 128>}, {transform_indices = @transform_7, window_bounds = array<i64: 1, 128, 128>}]} {
    %c0 = arith.constant 0 : index
    %c0_0 = arith.constant 0 : index
    %c0_1 = arith.constant 0 : index
    %0 = vector.load %arg3[%c0, %c0_0, %c0_1] : memref<1x128x128xf32, #tpu.memory_space<vmem>>, vector<1x128x128xf32>
    %1 = vector.shape_cast %0 : vector<1x128x128xf32> to vector<128x128xf32>
    %2 = arith.truncf %1 : vector<128x128xf32> to vector<128x128xbf16>
    %c0_2 = arith.constant 0 : index
    %c0_3 = arith.constant 0 : index
    %3 = vector.load %arg4[%c0_2, %c0_3] : memref<128x128xbf16, #tpu.memory_space<vmem>>, vector<128x128xbf16>
    %cst = arith.constant dense<0.000000e+00> : vector<128x128xf32>
    %4 = tpu.matmul %2, %3, %cst {dimension_numbers = #tpu.dot_dimension_numbers<[1], [0], [0], [1], [0, 0, 1, 1], [], []>} : vector<128x128xbf16>, vector<128x128xbf16>, vector<128x128xf32> -> vector<128x128xf32>
    %c0_4 = arith.constant 0 : index
    %c0_5 = arith.constant 0 : index
    %5 = vector.load %arg5[%c0_4, %c0_5] : memref<1x128xf32, #tpu.memory_space<vmem>>, vector<1x128xf32>
    %6 = vector.broadcast %5 : vector<1x128xf32> to vector<128x128xf32>
    %7 = arith.addf %4, %6 : vector<128x128xf32>
    %c1 = arith.constant 1 : index
    %8 = memref.load %arg2[%c1] : memref<3xf32, #tpu.memory_space<smem>>
    %cst_6 = arith.constant 0.000000e+00 : f32
    %9 = vector.broadcast %cst_6 : f32 to vector<128x128xf32>
    %10 = arith.cmpf oge, %7, %9 : vector<128x128xf32>
    %11 = vector.broadcast %8 : f32 to vector<128x128xf32>
    %12 = arith.mulf %11, %7 : vector<128x128xf32>
    %13 = arith.select %10, %7, %12 : vector<128x128xi1>, vector<128x128xf32>
    %14 = arith.truncf %13 : vector<128x128xf32> to vector<128x128xbf16>
    %15 = tpu.transpose %14, [1, 0] : vector<128x128xbf16> -> vector<128x128xbf16>
    %c0_7 = arith.constant 0 : index
    %c0_8 = arith.constant 0 : index
    %c0_9 = arith.constant 0 : index
    %16 = vector.load %arg8[%c0_7, %c0_8, %c0_9] : memref<1x128x128xbf16, #tpu.memory_space<vmem>>, vector<1x128x128xbf16>
    %17 = vector.shape_cast %16 : vector<1x128x128xbf16> to vector<128x128xbf16>
    %18 = vector.shape_cast %15 : vector<128x128xbf16> to vector<1x128x128xbf16>
    tpu.vector_store %arg8[%c0_7, %c0_8, %c0_9], %18 {strides = array<i32>} : memref<1x128x128xbf16, #tpu.memory_space<vmem>>, vector<1x128x128xbf16>,
    %c0_10 = arith.constant 0 : index
    %c0_11 = arith.constant 0 : index
    %19 = vector.load %arg6[%c0_10, %c0_11] : memref<128x128xbf16, #tpu.memory_space<vmem>>, vector<128x128xbf16>
    %cst_12 = arith.constant dense<0.000000e+00> : vector<128x128xf32>
    %20 = tpu.matmul %2, %19, %cst_12 {dimension_numbers = #tpu.dot_dimension_numbers<[1], [0], [0], [1], [0, 0, 1, 1], [], []>} : vector<128x128xbf16>, vector<128x128xbf16>, vector<128x128xf32> -> vector<128x128xf32>
    %c0_13 = arith.constant 0 : index
    %c0_14 = arith.constant 0 : index
    %21 = vector.load %arg7[%c0_13, %c0_14] : memref<1x128xf32, #tpu.memory_space<vmem>>, vector<1x128xf32>
    %22 = vector.broadcast %21 : vector<1x128xf32> to vector<128x128xf32>
    %23 = arith.addf %20, %22 : vector<128x128xf32>
    %c2 = arith.constant 2 : index
    %24 = memref.load %arg2[%c2] : memref<3xf32, #tpu.memory_space<smem>>
    %cst_15 = arith.constant 0.000000e+00 : f32
    %25 = vector.broadcast %cst_15 : f32 to vector<128x128xf32>
    %26 = arith.cmpf oge, %23, %25 : vector<128x128xf32>
    %27 = vector.broadcast %24 : f32 to vector<128x128xf32>
    %28 = arith.mulf %27, %23 : vector<128x128xf32>
    %29 = arith.select %26, %23, %28 : vector<128x128xi1>, vector<128x128xf32>
    %30 = arith.truncf %29 : vector<128x128xf32> to vector<128x128xbf16>
    %c0_16 = arith.constant 0 : index
    %c0_17 = arith.constant 0 : index
    %c0_18 = arith.constant 0 : index
    %31 = vector.load %arg9[%c0_16, %c0_17, %c0_18] : memref<1x128x128xbf16, #tpu.memory_space<vmem>>, vector<1x128x128xbf16>
    %32 = vector.shape_cast %31 : vector<1x128x128xbf16> to vector<128x128xbf16>
    %33 = vector.shape_cast %30 : vector<128x128xbf16> to vector<1x128x128xbf16>
    tpu.vector_store %arg9[%c0_16, %c0_17, %c0_18], %33 {strides = array<i32>} : memref<1x128x128xbf16, #tpu.memory_space<vmem>>, vector<1x128x128xbf16>,
    return
  }
  func.func @transform_0(%arg0: i32, %arg1: i32) -> i32 {
    %c0_i32 = arith.constant 0 : i32
    %c0_i32_0 = arith.constant 0 : i32
    return %c0_i32 : i32
  }
  func.func @transform_1(%arg0: i32, %arg1: i32) -> (i32, i32, i32) {
    %c0_i32 = arith.constant 0 : i32
    %c0_i32_0 = arith.constant 0 : i32
    return %arg0, %arg1, %c0_i32 : i32, i32, i32
  }
  func.func @transform_2(%arg0: i32, %arg1: i32) -> (i32, i32) {
    %c0_i32 = arith.constant 0 : i32
    %c0_i32_0 = arith.constant 0 : i32
    %c0_i32_1 = arith.constant 0 : i32
    return %c0_i32, %c0_i32_0 : i32, i32
  }
  func.func @transform_3(%arg0: i32, %arg1: i32) -> (i32, i32) {
    %c0_i32 = arith.constant 0 : i32
    %c0_i32_0 = arith.constant 0 : i32
    %c0_i32_1 = arith.constant 0 : i32
    return %c0_i32, %c0_i32_0 : i32, i32
  }
  func.func @transform_4(%arg0: i32, %arg1: i32) -> (i32, i32) {
    %c0_i32 = arith.constant 0 : i32
    %c0_i32_0 = arith.constant 0 : i32
    %c0_i32_1 = arith.constant 0 : i32
    return %c0_i32, %c0_i32_0 : i32, i32
  }
  func.func @transform_5(%arg0: i32, %arg1: i32) -> (i32, i32) {
    %c0_i32 = arith.constant 0 : i32
    %c0_i32_0 = arith.constant 0 : i32
    %c0_i32_1 = arith.constant 0 : i32
    return %c0_i32, %c0_i32_0 : i32, i32
  }
  func.func @transform_6(%arg0: i32, %arg1: i32) -> (i32, i32, i32) {
    %c0_i32 = arith.constant 0 : i32
    %c0_i32_0 = arith.constant 0 : i32
    return %arg0, %c0_i32, %arg1 : i32, i32, i32
  }
  func.func @transform_7(%arg0: i32, %arg1: i32) -> (i32, i32, i32) {
    %c0_i32 = arith.constant 0 : i32
    %c0_i32_0 = arith.constant 0 : i32
    return %arg0, %arg1, %c0_i32 : i32, i32, i32
  }
}

module attributes {stable_mosaic.version = 11 : i64} {
  func.func @_setup_kernel(%arg0: i32, %arg1: i32, %arg2: memref<3xf32, #tpu.memory_space<smem>>, %arg3: memref<1x128x128xf32, #tpu.memory_space<vmem>>, %arg4: memref<128x128xbf16, #tpu.memory_space<vmem>>, %arg5: memref<1x128xf32, #tpu.memory_space<vmem>>, %arg6: memref<128x128xbf16, #tpu.memory_space<vmem>>, %arg7: memref<1x128xf32, #tpu.memory_space<vmem>>, %arg8: memref<1x128x128xbf16, #tpu.memory_space<vmem>>, %arg9: memref<1x128x128xbf16, #tpu.memory_space<vmem>>) attributes {dimension_semantics = [#tpu.dimension_semantics<parallel>, #tpu.dimension_semantics<parallel>], iteration_bounds = array<i64: 2, 1>, scalar_prefetch = 0 : i64, scratch_operands = 0 : i64, tpu.core_type = #tpu.core_type<tc>, window_params = [{transform_indices = @transform_0, window_bounds = array<i64: 3>}, {transform_indices = @transform_1, window_bounds = array<i64: 1, 128, 128>}, {pipeline_mode = #tpu.pipeline_mode<synchronous>, transform_indices = @transform_2, window_bounds = array<i64: 128, 128>}, {pipeline_mode = #tpu.pipeline_mode<synchronous>, transform_indices = @transform_3, window_bounds = array<i64: 1, 128>}, {pipeline_mode = #tpu.pipeline_mode<synchronous>, transform_indices = @transform_4, window_bounds = array<i64: 128, 128>}, {pipeline_mode = #tpu.pipeline_mode<synchronous>, transform_indices = @transform_5, window_bounds = array<i64: 1, 128>}, {transform_indices = @transform_6, window_bounds = array<i64: 1, 128, 128>}, {transform_indices = @transform_7, window_bounds = array<i64: 1, 128, 128>}]} {
    %c0 = arith.constant 0 : index
    %c0_0 = arith.constant 0 : index
    %c0_1 = arith.constant 0 : index
    %0 = vector.load %arg3[%c0, %c0_0, %c0_1] : memref<1x128x128xf32, #tpu.memory_space<vmem>>, vector<1x128x128xf32>
    %1 = vector.shape_cast %0 : vector<1x128x128xf32> to vector<128x128xf32>
    %2 = arith.truncf %1 : vector<128x128xf32> to vector<128x128xbf16>
    %c0_2 = arith.constant 0 : index
    %c0_3 = arith.constant 0 : index
    %3 = vector.load %arg4[%c0_2, %c0_3] : memref<128x128xbf16, #tpu.memory_space<vmem>>, vector<128x128xbf16>
    %cst = arith.constant dense<0.000000e+00> : vector<128x128xf32>
    %4 = tpu.matmul %2, %3, %cst {dimension_numbers = #tpu.dot_dimension_numbers<[1], [0], [0], [1], [0, 0, 1, 1], [], []>} : vector<128x128xbf16>, vector<128x128xbf16>, vector<128x128xf32> -> vector<128x128xf32>
    %c0_4 = arith.constant 0 : index
    %c0_5 = arith.constant 0 : index
    %5 = vector.load %arg5[%c0_4, %c0_5] : memref<1x128xf32, #tpu.memory_space<vmem>>, vector<1x128xf32>
    %6 = vector.broadcast %5 : vector<1x128xf32> to vector<128x128xf32>
    %7 = arith.addf %4, %6 : vector<128x128xf32>
    %c1 = arith.constant 1 : index
    %8 = memref.load %arg2[%c1] : memref<3xf32, #tpu.memory_space<smem>>
    %cst_6 = arith.constant 0.000000e+00 : f32
    %9 = vector.broadcast %cst_6 : f32 to vector<128x128xf32>
    %10 = arith.cmpf oge, %7, %9 : vector<128x128xf32>
    %11 = vector.broadcast %8 : f32 to vector<128x128xf32>
    %12 = arith.mulf %11, %7 : vector<128x128xf32>
    %13 = arith.select %10, %7, %12 : vector<128x128xi1>, vector<128x128xf32>
    %14 = arith.truncf %13 : vector<128x128xf32> to vector<128x128xbf16>
    %15 = tpu.transpose %14, [1, 0] : vector<128x128xbf16> -> vector<128x128xbf16>
    %c0_7 = arith.constant 0 : index
    %c0_8 = arith.constant 0 : index
    %c0_9 = arith.constant 0 : index
    %16 = vector.load %arg8[%c0_7, %c0_8, %c0_9] : memref<1x128x128xbf16, #tpu.memory_space<vmem>>, vector<1x128x128xbf16>
    %17 = vector.shape_cast %16 : vector<1x128x128xbf16> to vector<128x128xbf16>
    %18 = vector.shape_cast %15 : vector<128x128xbf16> to vector<1x128x128xbf16>
    tpu.vector_store %arg8[%c0_7, %c0_8, %c0_9], %18 {strides = array<i32>} : memref<1x128x128xbf16, #tpu.memory_space<vmem>>, vector<1x128x128xbf16>,
    %c0_10 = arith.constant 0 : index
    %c0_11 = arith.constant 0 : index
    %19 = vector.load %arg6[%c0_10, %c0_11] : memref<128x128xbf16, #tpu.memory_space<vmem>>, vector<128x128xbf16>
    %cst_12 = arith.constant dense<0.000000e+00> : vector<128x128xf32>
    %20 = tpu.matmul %2, %19, %cst_12 {dimension_numbers = #tpu.dot_dimension_numbers<[1], [0], [0], [1], [0, 0, 1, 1], [], []>} : vector<128x128xbf16>, vector<128x128xbf16>, vector<128x128xf32> -> vector<128x128xf32>
    %c0_13 = arith.constant 0 : index
    %c0_14 = arith.constant 0 : index
    %21 = vector.load %arg7[%c0_13, %c0_14] : memref<1x128xf32, #tpu.memory_space<vmem>>, vector<1x128xf32>
    %22 = vector.broadcast %21 : vector<1x128xf32> to vector<128x128xf32>
    %23 = arith.addf %20, %22 : vector<128x128xf32>
    %c2 = arith.constant 2 : index
    %24 = memref.load %arg2[%c2] : memref<3xf32, #tpu.memory_space<smem>>
    %cst_15 = arith.constant 0.000000e+00 : f32
    %25 = vector.broadcast %cst_15 : f32 to vector<128x128xf32>
    %26 = arith.cmpf oge, %23, %25 : vector<128x128xf32>
    %27 = vector.broadcast %24 : f32 to vector<128x128xf32>
    %28 = arith.mulf %27, %23 : vector<128x128xf32>
    %29 = arith.select %26, %23, %28 : vector<128x128xi1>, vector<128x128xf32>
    %30 = arith.truncf %29 : vector<128x128xf32> to vector<128x128xbf16>
    %c0_16 = arith.constant 0 : index
    %c0_17 = arith.constant 0 : index
    %c0_18 = arith.constant 0 : index
    %31 = vector.load %arg9[%c0_16, %c0_17, %c0_18] : memref<1x128x128xbf16, #tpu.memory_space<vmem>>, vector<1x128x128xbf16>
    %32 = vector.shape_cast %31 : vector<1x128x128xbf16> to vector<128x128xbf16>
    %33 = vector.shape_cast %30 : vector<128x128xbf16> to vector<1x128x128xbf16>
    tpu.vector_store %arg9[%c0_16, %c0_17, %c0_18], %33 {strides = array<i32>} : memref<1x128x128xbf16, #tpu.memory_space<vmem>>, vector<1x128x128xbf16>,
    return
  }
  func.func @transform_0(%arg0: i32, %arg1: i32) -> i32 {
    %c0_i32 = arith.constant 0 : i32
    %c0_i32_0 = arith.constant 0 : i32
    return %c0_i32 : i32
  }
  func.func @transform_1(%arg0: i32, %arg1: i32) -> (i32, i32, i32) {
    %c0_i32 = arith.constant 0 : i32
    %c0_i32_0 = arith.constant 0 : i32
    return %arg0, %arg1, %c0_i32 : i32, i32, i32
  }
  func.func @transform_2(%arg0: i32, %arg1: i32) -> (i32, i32) {
    %c0_i32 = arith.constant 0 : i32
    %c0_i32_0 = arith.constant 0 : i32
    %c0_i32_1 = arith.constant 0 : i32
    return %c0_i32, %c0_i32_0 : i32, i32
  }
  func.func @transform_3(%arg0: i32, %arg1: i32) -> (i32, i32) {
    %c0_i32 = arith.constant 0 : i32
    %c0_i32_0 = arith.constant 0 : i32
    %c0_i32_1 = arith.constant 0 : i32
    return %c0_i32, %c0_i32_0 : i32, i32
  }
  func.func @transform_4(%arg0: i32, %arg1: i32) -> (i32, i32) {
    %c0_i32 = arith.constant 0 : i32
    %c0_i32_0 = arith.constant 0 : i32
    %c0_i32_1 = arith.constant 0 : i32
    return %c0_i32, %c0_i32_0 : i32, i32
  }
  func.func @transform_5(%arg0: i32, %arg1: i32) -> (i32, i32) {
    %c0_i32 = arith.constant 0 : i32
    %c0_i32_0 = arith.constant 0 : i32
    %c0_i32_1 = arith.constant 0 : i32
    return %c0_i32, %c0_i32_0 : i32, i32
  }
  func.func @transform_6(%arg0: i32, %arg1: i32) -> (i32, i32, i32) {
    %c0_i32 = arith.constant 0 : i32
    %c0_i32_0 = arith.constant 0 : i32
    return %arg0, %c0_i32, %arg1 : i32, i32, i32
  }
  func.func @transform_7(%arg0: i32, %arg1: i32) -> (i32, i32, i32) {
    %c0_i32 = arith.constant 0 : i32
    %c0_i32_0 = arith.constant 0 : i32
    return %arg0, %arg1, %c0_i32 : i32, i32, i32
  }
}

</mosaic_0001>

<bundles_post_ra>
// kernel: tpu_custom_call.1
= control target key start
LH: loop header
LB: loop body
LE: loop exit
PB: predicated region body
PF: predicated region fallthrough
CT: control target
= control target key end

     0   :  { %s1974_s0 = inlined_call_operand.hbm [shape: f32[3], index: 0, kind: input, shape index: {}]   ;;  %s1975_s1 = inlined_call_operand.hbm [shape: f32[2,128,128], index: 1, kind: input, shape index: {}]   ;;  %s1976_s2 = inlined_call_operand.hbm [shape: bf16[128,128], index: 2, kind: input, shape index: {}]   ;;  %s1977_s3 = inlined_call_operand.vmem [shape: f32[1,128], index: 3, kind: input, shape index: {}]   ;;  %s1978_s4 = inlined_call_operand.hbm [shape: bf16[128,128], index: 4, kind: input, shape index: {}]   ;;  %s1979_s5 = inlined_call_operand.vmem [shape: f32[1,128], index: 5, kind: input, shape index: {}]   ;;  %s1980_s6 = inlined_call_operand.hbm [shape: bf16[2,128,128], index: 6, kind: output, shape index: {0}]   ;;  %s1981_s7 = inlined_call_operand.hbm [shape: bf16[2,128,128], index: 7, kind: output, shape index: {1}]  }
   0x1   :  { %1984 = sst [smem:[#allocation20_spill]] %s1974_s0 }
   0x2   :  { %1985 = sst [smem:[#allocation21_spill]] %s1976_s2 }
   0x3   :  { %1986 = sst [smem:[#allocation22_spill]] %s1978_s4 }
   0x4   :  { %13 = vsyncpa [#allocation5], 0 }
   0x5   :  { %14 = vsyncpa [#allocation3], 0 }
   0x6   :  { %16 = vsyncpa [#allocation3 + $0x1], 0 }
   0x7   :  { %17 = vsyncpa [#allocation8], 0 }
   0x8   :  { %18 = vsyncpa [#allocation4], 0 }
   0x9   :  { %20 = vsyncpa [#allocation4 + $0x1], 0 }
   0xa   :  { %21 = vsyncpa [#allocation12], 0 }
   0xb   :  { %23 = vsyncpa [#allocation12 + $0x1], 0  ;;  %s1616_s24 = smov 0   ;;  %s1618_s25 = smov 0  }
   0xc   :  { %s1620_s26 = smov 0   ;;  %s1622_s27 = smov 0  }
   0xd   :  { %s1624_s28 = smov 0   ;;  %s1626_s29 = smov 0  }
   0xe LB: > { %s1059_s30 = sadd.s32 4294967295, %s1565_s29   ;;  %s1060_s8 = sadd.s32 4294967294, %s1565_s29   ;;  %s1565_s29 = sphi %s1626_s29, %s29_s29   ;;  %s1561_s28 = sphi %s1624_s28, %s2006_s28   ;;  %s1557_s27 = sphi %s1622_s27, %s2005_s27   ;;  %s1553_s26 = sphi %s1620_s26, %s2004_s26   ;;  %s1549_s25 = sphi %s1618_s25, %s2003_s25   ;;  %s1545_s24 = sphi %s1616_s24, %s2002_s24  }
   0xf   : > { %p84_p0 = scmp.ne.s32.totalorder %s1549_s25, %s1545_s24  ;;  %p1650_p1 = scmp.eq.s32.totalorder %s1059_s30, 0 }
  0x10   : > { %p1654_p2 = scmp.eq.s32.totalorder %s1059_s30, 1  ;;  %p200_p3 = scmp.eq.s32.totalorder %s1060_s8, 1 }
  0x11   : > { %p1660_p4 = por %p1650_p1, %p84_p0  ;;  %p1061_p5 = scmp.ge.s32.totalorder %s1565_s29, 1 }
  0x12   : > { %p1665_p6 = por %p200_p3, %p84_p0  ;;  %p235_p7 = scmp.lt.s32.totalorder %s1565_s29, 3 }
  0x13   : > { %s1992_s2 = sld [smem:[#allocation21_spill]]  ;;  %s1567_s17 = smov [#allocation7]  }
  0x14   : > { %s1990_s12 = scalar_select %p1665_p6, 1, 0 }
  0x15   : > { %p1673_p8 = pnand %p1061_p5, %p235_p7  ;;  %s258_s18 = sshll.u32 %s1567_s17, 4  ;;  %s259_s18 = int_to_ptr.vmem [resolvable:$true] %s258_s18 }
  0x16   : > { %1991 = sst [smem:[#allocation18_spill]] %s1990_s12  ;;  %p1065_p11 = scmp.ge.s32.totalorder %s1565_s29, 2 }
  0x17   : > { %p1250_p9 = pneg %p1673_p8  ;;  %s1995_s0 = sld [smem:[#allocation20_spill]] }
  0x18   : > { %s1568_s23 = smov 64   ;;  %s1569_s30 = smov 4  }
  0x19   : > { %s256_s15 = sshll.u32 %s1992_s2, 4  ;;  %p1681_p10 = pnand %p1250_p9, %p1650_p1  ;;  %s257_s15 = int_to_ptr.hbm [resolvable:$true] %s256_s15 }
  0x1a   : > { %s1570_s8 = smov [#allocation2]   ;;  %s1996_s4 = sld [smem:[#allocation22_spill]] }
  0x1b   : > { %1256 = dma.hbm_to_vmem [thread:$0]  (!%p1681_p10), %s257_s15, 1024, %s259_s18, [#allocation8], %s1568_s23, %s1568_s23, %s1569_s30  }
  0x1c   : > { %s1571_s20 = smov [#allocation9]   ;;  %s71_s15 = sadd.s32 1, %s1553_s26 }
  0x1d   : > { %s247_s22 = sshll.u32 %s1995_s0, 4  ;;  %s275_s21 = sshll.u32 %s1571_s20, 4  ;;  %s248_s22 = int_to_ptr.hbm [resolvable:$true] %s247_s22  ;;  %s276_s21 = int_to_ptr.vmem [resolvable:$true] %s275_s21 }
  0x1e   : > { %1253 = dma.hbm_to_smem (!%p1681_p10), %s248_s22, 16, %s1570_s8, [#allocation5]  }
  0x1f   : > { %s41_s18 = sadd.s32 1, %s1561_s28  ;;  %p78_p12 = scmp.ne.s32.totalorder %s1553_s26, %s1549_s25 }
  0x20   : > { %s273_s17 = sshll.u32 %s1996_s4, 4  ;;  %p43_p13 = scmp.ge.s32.totalorder %s41_s18, 2  ;;  %s274_s17 = int_to_ptr.hbm [resolvable:$true] %s273_s17 }
  0x21   : > { %1259 = dma.hbm_to_vmem [thread:$0]  (!%p1681_p10), %s274_s17, 1024, %s276_s21, [#allocation8], %s1568_s23, %s1568_s23, %s1569_s30  }
  0x22   : > { %p79_p0 = scmp.eq.s32.totalorder %s1565_s29, 0  ;;  %p1705_p3 = por %p1654_p2, %p78_p12 }
  0x23   : > { %p1274_p5 = scmp.lt.s32.totalorder %s1565_s29, 2  ;;  %s2008_s18 = smov (%p43_p13, %s41_s18), 0 }
  0x24   : > { %1998 = sst [smem:[#allocation19_spill]] %s2008_s18  ;;  %p1712_p7 = por %p79_p0, %p78_p12 }
  0x25   : > { %s292_s19 = sand.u32 1, %s1553_s26   ;;  %s66_s23 = ssub.s32 %s1561_s28, %s2008_s18 }
  0x26   : > { %p69_p9 = scmp.eq.s32.totalorder %s66_s23, 0  ;;  %s1066_s30 = sshll.u32 %s292_s19, 7 }
  0x27   : > { %s1150_s13 = sshll.u32 %s1561_s28, 7  ;;  %s296_s21 = scalar_lea.vmem [#allocation6], %s1066_s30 }
  0x28   : > { %s1721_s10 = scalar_select %p69_p9, %s1553_s26, %s71_s15  }
  0x29   : > { %s303_s20 = scalar_lea.hbm %s1975_s1, %s1150_s13  ;;  %s306_s0 = sshll.u32 %s296_s21, 4  ;;  %s307_s0 = int_to_ptr.vmem [resolvable:$true] %s306_s0 }
  0x2a   : > { %s304_s2 = sshll.u32 %s303_s20, 4  ;;  %p1261_p2 = pnand %p1274_p5, %p1712_p7  ;;  %s305_s2 = int_to_ptr.hbm [resolvable:$true] %s304_s2 }
  0x2b   : > { %s293_s4 = scalar_lea.sflag [#allocation3], %s292_s19  ;;  %s1572_s12 = smov 128  }
  0x2c   : > { %s1573_s18 = smov 8   ;;  %318 = sbr.rel (%p1673_p8) target bundleno = 524 (0x20c), region = 44 }
  0x2d   : > { %1263 = dma.hbm_to_vmem [thread:$0]  (!%p1261_p2), %s305_s2, 2048, %s307_s0, %s293_s4, %s1572_s12, %s1572_s12, %s1573_s18  }
  0x31   : > { %1524 = dma.done.wait (%p1650_p1), [#allocation5], 16  }
  0x32   : > { %1526 = vsyncadd (%p1650_p1), [#allocation5], 4294967280  ;;  %s1737_s15 = sand.u32 1, %s1549_s25  }
  0x33   : > { %s1071_s8 = sshll.u32 %s1737_s15, 7  ;;  %s326_s19 = scalar_lea.sflag [#allocation3], %s1737_s15 }
  0x34   : > { %s1741_s23 = scalar_lea.vmem [#allocation6], %s1071_s8 }
  0x35   : > { %1528 = dma.done.wait (%p1660_p4), %s326_s19, 2048  }
  0x36   : > { %1530 = vsyncadd (%p1660_p4), %s326_s19, 4294965248 }
  0x37   : > { %1532 = dma.done.wait (%p1650_p1), [#allocation8], 2048  }
  0x38   : > { %1534 = vsyncadd (%p1650_p1), [#allocation8], 4294965248 }
  0x39   : > { %345 = sfence }
  0x3a   : > { %v1158_v0 = vld [vmem:[#allocation7 + $0x38] sm:$0xff]  ;;  %v1157_v1 = vld [vmem:[#allocation7 + $0x30] sm:$0xff]  ;;  %v1156_v2 = vld [vmem:[#allocation7 + $0x28] sm:$0xff]  ;;  %s1108_s0 = sld [smem:[#allocation2 + $0x1]]  ;;  %s1074_s11 = sshll.u32 %s1737_s15, 6 }
  0x3b   : > { %471 = vmatpush.bf16.msra.mxu0 %v1158_v0  ;;  %1216 = vmatpush.bf16.msra.mxu2 %v1158_v0  ;;  %v1155_v3 = vld [vmem:[#allocation7 + $0x20] sm:$0xff]  ;;  %v1154_v4 = vld [vmem:[#allocation7 + $0x18] sm:$0xff]  ;;  %v1153_v5 = vld [vmem:[#allocation7 + $0x10] sm:$0xff]  ;;  %s1141_s9 = sld [smem:[#allocation2 + $0x2]]  ;;  %s1846_s18 = scalar_lea.vmem [#allocation10], %s1074_s11 }
  0x3c   : > { %v1152_v6 = vld [vmem:[#allocation7 + $0x8] sm:$0xff]  ;;  %v1151_v7 = vld [vmem:[#allocation7] sm:$0xff]  ;;  %v381_v11 = vld [vmem:[%s1741_s23 + $0x10] sm:$0xff]  ;;  %s1861_s30 = scalar_lea.vmem [#allocation11], %s1074_s11  ;;  %s1167_s13 = sshll.u32 %s1557_s27, 6 }
  0x3d   : > { %v379_v8 = vld [vmem:[%s1741_s23] sm:$0xff]  ;;  %v380_v9 = vld [vmem:[%s1741_s23 + $0x8] sm:$0xff]  ;;  %v382_v12 = vld [vmem:[%s1741_s23 + $0x18] sm:$0xff]  ;;  %s902_s20 = scalar_lea.hbm %s1981_s7, %s1167_s13  ;;  %s903_s21 = sshll.u32 %s1861_s30, 4  ;;  %s904_s21 = int_to_ptr.vmem [resolvable:$true] %s903_s21 }
  0x3e   : > { %v1753_v10 = vpack.c.bf16 %v380_v9, %v379_v8  ;;  %v1758_v13 = vpack.c.bf16 %v382_v12, %v381_v11  ;;  %v387_v14 = vld [vmem:[%s1741_s23 + $0x40] sm:$0xff]  ;;  %v388_v15 = vld [vmem:[%s1741_s23 + $0x48] sm:$0xff]  ;;  %v389_v19 = vld [vmem:[%s1741_s23 + $0x50] sm:$0xff]  ;;  %s905_s8 = sshll.u32 %s902_s20, 4  ;;  %s871_s19 = scalar_lea.sflag [#allocation12], %s1737_s15  ;;  %s906_s8 = int_to_ptr.hbm [resolvable:$true] %s905_s8 }
  0x3f   : > { %472 = vmatpush.bf16.msra.mxu0 %v1157_v1  ;;  %1217 = vmatpush.bf16.msra.mxu2 %v1157_v1  ;;  %v1762_v16 = vpack.c.bf16 %v388_v15, %v387_v14  ;;  %v383_v17 = vld [vmem:[%s1741_s23 + $0x20] sm:$0xff]  ;;  %v384_v18 = vld [vmem:[%s1741_s23 + $0x28] sm:$0xff]  ;;  %v390_v20 = vld [vmem:[%s1741_s23 + $0x58] sm:$0xff] }
  0x40   : > { %v1770_v21 = vpack.c.bf16 %v384_v18, %v383_v17  ;;  %v1772_v22 = vpack.c.bf16 %v390_v20, %v389_v19  ;;  %v385_v23 = vld [vmem:[%s1741_s23 + $0x30] sm:$0xff]  ;;  %v386_v24 = vld [vmem:[%s1741_s23 + $0x38] sm:$0xff]  ;;  %v391_v25 = vld [vmem:[%s1741_s23 + $0x60] sm:$0xff]  ;;  %v1797_v35 = vstv %s1108_s0 }
  0x41   : > { %v392_v26 = vld [vmem:[%s1741_s23 + $0x68] sm:$0xff]  ;;  %v1780_v27 = vpack.c.bf16 %v386_v24, %v385_v23  ;;  %v393_v29 = vld [vmem:[%s1741_s23 + $0x70] sm:$0xff]  ;;  %v394_v30 = vld [vmem:[%s1741_s23 + $0x78] sm:$0xff]  ;;  %s1457_s23 = sshra.s32 %s906_s8, 4  ;;  %s1458_s23 = int_to_ptr.hbm [resolvable:$true] %s1457_s23 }
  0x42   : > { %v1782_v28 = vpack.c.bf16 %v392_v26, %v391_v25  ;;  %v1788_v31 = vpack.c.bf16 %v394_v30, %v393_v29  ;;  %v1794_v33 = vld [vmem:[%s1977_s3] ss:$0 sm:$0xff]  ;;  %v1166_v53 = vld [vmem:[#allocation9 + $0x38] sm:$0xff]  ;;  %v1165_v54 = vld [vmem:[#allocation9 + $0x30] sm:$0xff]  ;;  %s1459_s0 = scalar_lea.hbm %s1458_s23, 64  ;;  %p1464_p10 = scmp.lt.s32.totalorder %s1458_s23, %s1981_s7 }
  0x43   : > { %473 = vmatpush.bf16.msra.mxu0 %v1156_v2  ;;  %1218 = vmatpush.bf16.msra.mxu2 %v1156_v2  ;;  %v1164_v56 = vld [vmem:[#allocation9 + $0x28] sm:$0xff]  ;;  %v1163_v1 = vld [vmem:[#allocation9 + $0x20] sm:$0xff]  ;;  %p1460_p1 = scmp.ne.s32.totalorder %s1458_s23, %s1459_s0 }
  0x44   : > { %1224 = vmatpush.bf16.msra.mxu3 %v1166_v53  ;;  %734 = vmatpush.bf16.msra.mxu1 %v1166_v53  ;;  %v1160_v11 = vld [vmem:[#allocation9 + $0x8] sm:$0xff]  ;;  %v1159_v19 = vld [vmem:[#allocation9] sm:$0xff] }
  0x45   : > { %p1461_p4 = pnand %p1460_p1, %p1705_p3 }
  0x47   : > { %474 = vmatpush.bf16.msra.mxu0 %v1155_v3  ;;  %1219 = vmatpush.bf16.msra.mxu2 %v1155_v3  ;;  %v1162_v3 = vld [vmem:[#allocation9 + $0x18] sm:$0xff]  ;;  %p1462_p8 = pneg %p1461_p4 }
  0x48   : > { %1225 = vmatpush.bf16.msra.mxu3 %v1165_v54  ;;  %735 = vmatpush.bf16.msra.mxu1 %v1165_v54 }
  0x4b   : > { %475 = vmatpush.bf16.msra.mxu0 %v1154_v4  ;;  %1220 = vmatpush.bf16.msra.mxu2 %v1154_v4 }
  0x4c   : > { %1226 = vmatpush.bf16.msra.mxu3 %v1164_v56  ;;  %736 = vmatpush.bf16.msra.mxu1 %v1164_v56 }
  0x4f   : > { %476 = vmatpush.bf16.msra.mxu0 %v1153_v5  ;;  %1221 = vmatpush.bf16.msra.mxu2 %v1153_v5 }
  0x50   : > { %1227 = vmatpush.bf16.msra.mxu3 %v1163_v1  ;;  %737 = vmatpush.bf16.msra.mxu1 %v1163_v1 }
  0x53   : > { %477 = vmatpush.bf16.msra.mxu0 %v1152_v6  ;;  %1222 = vmatpush.bf16.msra.mxu2 %v1152_v6  ;;  %v1161_v6 = vld [vmem:[#allocation9 + $0x10] sm:$0xff] }
  0x54   : > { %1228 = vmatpush.bf16.msra.mxu3 %v1162_v3  ;;  %738 = vmatpush.bf16.msra.mxu1 %v1162_v3 }
  0x57   : > { %478 = vmatpush.bf16.msra.mxu0 %v1151_v7  ;;  %1223 = vmatpush.bf16.msra.mxu2 %v1151_v7 }
  0x58   : > { %1229 = vmatpush.bf16.msra.mxu3 %v1161_v6  ;;  %739 = vmatpush.bf16.msra.mxu1 %v1161_v6 }
  0x5a   : > { %479 = vmatmul.bf16.vlgmr.msra.gmra.mxu0 %v1753_v10  ;;  %499 = vmatmul.bf16.vlgmr.msra.gmra.mxu2 %v1762_v16 }
  0x5c   : > { %1230 = vmatpush.bf16.msra.mxu3 %v1160_v11  ;;  %740 = vmatpush.bf16.msra.mxu1 %v1160_v11 }
  0x60   : > { %1231 = vmatpush.bf16.msra.mxu3 %v1159_v19  ;;  %741 = vmatpush.bf16.msra.mxu1 %v1159_v19 }
  0x63   : > { %762 = vmatmul.bf16.vlgmr.msra.gmra.mxu3 %v1762_v16  ;;  %742 = vmatmul.bf16.vlgmr.msra.gmra.mxu1 %v1753_v10 }
  0x6a   : > { %484 = vmatmul.bf16.gmra.mxu0 %v1758_v13  ;;  %504 = vmatmul.bf16.gmra.mxu2 %v1772_v22 }
  0x73   : > { %767 = vmatmul.bf16.gmra.mxu3 %v1772_v22  ;;  %747 = vmatmul.bf16.gmra.mxu1 %v1758_v13 }
  0x7a   : > { %489 = vmatmul.bf16.gmra.mxu0 %v1770_v21  ;;  %509 = vmatmul.bf16.gmra.mxu2 %v1782_v28 }
  0x83   : > { %772 = vmatmul.bf16.gmra.mxu3 %v1782_v28  ;;  %752 = vmatmul.bf16.gmra.mxu1 %v1770_v21 }
  0x8a   : > { %494 = vmatmul.bf16.gmra.mxu0 %v1780_v27  ;;  %514 = vmatmul.bf16.gmra.mxu2 %v1788_v31 }
  0x93   : > { %777 = vmatmul.bf16.gmra.mxu3 %v1788_v31  ;;  %757 = vmatmul.bf16.gmra.mxu1 %v1780_v27  ;;  %v1842_v27 = vld [vmem:[%s1979_s5] ss:$0 sm:$0xff] }
  0xd7   : > { %v480_v32 = vpop.f32.mrf.mxu0 }
  0xd8   : > { %v481_v34 = vadd.f32 %v1794_v33, %v480_v32 }
  0xda   : > { %v538_v37 = vmul.f32 %v1797_v35, %v481_v34  ;;  %vm521_vm0 = vcmp.ge.f32.partialorder %v481_v34, 0.0 }
  0xdc   : > { %v554_v40 = vsel %vm521_vm0, %v481_v34, %v538_v37 }
  0xdd   : > { %v500_v60 = vpop.f32.mrf.mxu2 }
  0xde   : > { %v501_v20 = vadd.f32 %v1794_v33, %v500_v60 }
  0xdf   : > { %v482_v36 = vpop.f32.mrf.mxu0 }
  0xe0   : > { %v483_v38 = vadd.f32 %v1794_v33, %v482_v36  ;;  %v546_v24 = vmul.f32 %v1797_v35, %v501_v20  ;;  %vm529_vm8 = vcmp.ge.f32.partialorder %v501_v20, 0.0 }
  0xe2   : > { %v539_v39 = vmul.f32 %v1797_v35, %v483_v38  ;;  %vm522_vm1 = vcmp.ge.f32.partialorder %v483_v38, 0.0  ;;  %v562_v29 = vsel %vm529_vm8, %v501_v20, %v546_v24 }
  0xe4   : > { %v555_v41 = vsel %vm522_vm1, %v483_v38, %v539_v39 }
  0xe5   : > { %v570_v42 = vpack.c.bf16 %v555_v41, %v554_v40  ;;  %v502_v4 = vpop.f32.mrf.mxu2 }
  0xe6   : > { %v503_v23 = vadd.f32 %v1794_v33, %v502_v4 }
  0xe7   : > { %v485_v43 = vpop.f32.mrf.mxu0  ;;  %578 = vxpose.xlu0.c.b16.start [1/8] %v570_v42, 128 }
  0xe8   : > { %v486_v44 = vadd.f32 %v1794_v33, %v485_v43  ;;  %v547_v25 = vmul.f32 %v1797_v35, %v503_v23  ;;  %vm530_vm9 = vcmp.ge.f32.partialorder %v503_v23, 0.0 }
  0xea   : > { %v540_v46 = vmul.f32 %v1797_v35, %v486_v44  ;;  %vm523_vm2 = vcmp.ge.f32.partialorder %v486_v44, 0.0  ;;  %v563_v30 = vsel %vm530_vm9, %v503_v23, %v547_v25 }
  0xeb   : > { %v574_v32 = vpack.c.bf16 %v563_v30, %v562_v29 }
  0xec   : > { %v556_v49 = vsel %vm523_vm2, %v486_v44, %v540_v46 }
  0xed   : > { %v505_v18 = vpop.f32.mrf.mxu2 }
  0xee   : > { %v506_v36 = vadd.f32 %v1794_v33, %v505_v18 }
  0xef   : > { %v487_v45 = vpop.f32.mrf.mxu0 }
  0xf0   : > { %v488_v47 = vadd.f32 %v1794_v33, %v487_v45  ;;  %v548_v10 = vmul.f32 %v1797_v35, %v506_v36  ;;  %vm531_vm10 = vcmp.ge.f32.partialorder %v506_v36, 0.0 }
  0xf2   : > { %v541_v48 = vmul.f32 %v1797_v35, %v488_v47  ;;  %vm524_vm3 = vcmp.ge.f32.partialorder %v488_v47, 0.0  ;;  %v564_v38 = vsel %vm531_vm10, %v506_v36, %v548_v10 }
  0xf4   : > { %v557_v50 = vsel %vm524_vm3, %v488_v47, %v541_v48 }
  0xf5   : > { %v571_v51 = vpack.c.bf16 %v557_v50, %v556_v49  ;;  %v507_v26 = vpop.f32.mrf.mxu2 }
  0xf6   : > { %v508_v37 = vadd.f32 %v1794_v33, %v507_v26 }
  0xf7   : > { %v490_v52 = vpop.f32.mrf.mxu0  ;;  %579 = vxpose.xlu0.c.b16.cont [2/8] %v571_v51, 128 }
  0xf8   : > { %v491_v55 = vadd.f32 %v1794_v33, %v490_v52  ;;  %v549_v16 = vmul.f32 %v1797_v35, %v508_v37  ;;  %vm532_vm11 = vcmp.ge.f32.partialorder %v508_v37, 0.0 }
  0xfa   : > { %v542_v58 = vmul.f32 %v1797_v35, %v491_v55  ;;  %vm525_vm4 = vcmp.ge.f32.partialorder %v491_v55, 0.0  ;;  %v565_v39 = vsel %vm532_vm11, %v508_v37, %v549_v16 }
  0xfb   : > { %v575_v41 = vpack.c.bf16 %v565_v39, %v564_v38 }
  0xfc   : > { %v558_v62 = vsel %vm525_vm4, %v491_v55, %v542_v58  ;;  %v1851_v58 = vstv %s1141_s9  ;;  %s1463_s9 = scalar_lea.hbm %s1981_s7, 128 }
  0xfd   : > { %v510_v34 = vpop.f32.mrf.mxu2  ;;  %p1465_p12 = scmp.lt.s32.totalorder %s1463_s9, %s1459_s0 }
  0xfe   : > { %v511_v42 = vadd.f32 %v1794_v33, %v510_v34 }
  0xff   : > { %v492_v57 = vpop.f32.mrf.mxu0  ;;  %p1466_p13 = por %p1465_p12, %p1464_p10 }
 0x100   : > { %v493_v59 = vadd.f32 %v1794_v33, %v492_v57  ;;  %v550_v22 = vmul.f32 %v1797_v35, %v511_v42  ;;  %vm533_vm12 = vcmp.ge.f32.partialorder %v511_v42, 0.0 }
 0x101   : > { %p1467_p0 = pnand %p1466_p13, %p1462_p8 }
 0x102   : > { %v543_v61 = vmul.f32 %v1797_v35, %v493_v59  ;;  %vm526_vm5 = vcmp.ge.f32.partialorder %v493_v59, 0.0  ;;  %v566_v45 = vsel %vm533_vm12, %v511_v42, %v550_v22 }
 0x104   : > { %v559_v63 = vsel %vm526_vm5, %v493_v59, %v543_v61  ;;  %v763_v59 = vpop.f32.mrf.mxu3 }
 0x105   : > { %v572_v0 = vpack.c.bf16 %v559_v63, %v558_v62  ;;  %v512_v40 = vpop.f32.mrf.mxu2  ;;  %v764_v62 = vadd.f32 %v1842_v27, %v763_v59 }
 0x106   : > { %v513_v43 = vadd.f32 %v1794_v33, %v512_v40 }
 0x107   : > { %v495_v2 = vpop.f32.mrf.mxu0  ;;  %580 = vxpose.xlu0.c.b16.cont [3/8] %v572_v0, 128  ;;  %vm792_vm2 = vcmp.ge.f32.partialorder %v764_v62, 0.0 }
 0x108   : > { %v496_v5 = vadd.f32 %v1794_v33, %v495_v2  ;;  %v551_v44 = vmul.f32 %v1797_v35, %v513_v43  ;;  %vm534_vm13 = vcmp.ge.f32.partialorder %v513_v43, 0.0 }
 0x10a   : > { %v544_v8 = vmul.f32 %v1797_v35, %v496_v5  ;;  %vm527_vm6 = vcmp.ge.f32.partialorder %v496_v5, 0.0  ;;  %v567_v46 = vsel %vm534_vm13, %v513_v43, %v551_v44 }
 0x10b   : > { %v576_v47 = vpack.c.bf16 %v567_v46, %v566_v45 }
 0x10c   : > { %v560_v14 = vsel %vm527_vm6, %v496_v5, %v544_v8  ;;  %v809_v5 = vmul.f32 %v1851_v58, %v764_v62  ;;  %v765_v8 = vpop.f32.mrf.mxu3 }
 0x10d   : > { %v515_v13 = vpop.f32.mrf.mxu2 }
 0x10e   : > { %v516_v49 = vadd.f32 %v1794_v33, %v515_v13 }
 0x10f   : > { %v497_v7 = vpop.f32.mrf.mxu0 }
 0x110   : > { %v498_v9 = vadd.f32 %v1794_v33, %v497_v7  ;;  %v552_v21 = vmul.f32 %v1797_v35, %v516_v49  ;;  %vm535_vm14 = vcmp.ge.f32.partialorder %v516_v49, 0.0 }
 0x112   : > { %v545_v12 = vmul.f32 %v1797_v35, %v498_v9  ;;  %vm528_vm7 = vcmp.ge.f32.partialorder %v498_v9, 0.0  ;;  %v568_v51 = vsel %vm535_vm14, %v516_v49, %v552_v21 }
 0x114   : > { %v561_v15 = vsel %vm528_vm7, %v498_v9, %v545_v12  ;;  %v766_v12 = vadd.f32 %v1842_v27, %v765_v8  ;;  %v768_v23 = vpop.f32.mrf.mxu3 }
 0x115   : > { %v573_v17 = vpack.c.bf16 %v561_v15, %v560_v14  ;;  %v517_v48 = vpop.f32.mrf.mxu2  ;;  %v825_v15 = vsel %vm792_vm2, %v764_v62, %v809_v5  ;;  %v769_v26 = vadd.f32 %v1842_v27, %v768_v23 }
 0x116   : > { %v518_v50 = vadd.f32 %v1794_v33, %v517_v48  ;;  %vm793_vm3 = vcmp.ge.f32.partialorder %v766_v12, 0.0 }
 0x117   : > { %581 = vxpose.xlu0.c.b16.cont [4/8] %v573_v17, 128  ;;  %v810_v17 = vmul.f32 %v1851_v58, %v766_v12  ;;  %v811_v10 = vmul.f32 %v1851_v58, %v769_v26  ;;  %vm794_vm6 = vcmp.ge.f32.partialorder %v769_v26, 0.0 }
 0x118   : > { %v553_v28 = vmul.f32 %v1797_v35, %v518_v50  ;;  %vm536_vm15 = vcmp.ge.f32.partialorder %v518_v50, 0.0  ;;  %v743_v35 = vpop.f32.mrf.mxu1 }
 0x119   : > { %v744_v57 = vadd.f32 %v1842_v27, %v743_v35  ;;  %v826_v18 = vsel %vm793_vm3, %v766_v12, %v810_v17  ;;  %v827_v13 = vsel %vm794_vm6, %v769_v26, %v811_v10 }
 0x11a   : > { %v569_v52 = vsel %vm536_vm15, %v518_v50, %v553_v28  ;;  %v1192_v20 = vpack.c.bf16 %v826_v18, %v825_v15 }
 0x11b   : > { %v577_v53 = vpack.c.bf16 %v569_v52, %v568_v51  ;;  %v801_v60 = vmul.f32 %v1851_v58, %v744_v57  ;;  %vm784_vm0 = vcmp.ge.f32.partialorder %v744_v57, 0.0 }
 0x11c   : > { %1212 = vst [vmem:[%s1861_s30 + $0x20] sm:$0xff] %v1192_v20   ;;  %v770_v39 = vpop.f32.mrf.mxu3 }
 0x11d   : > { %v817_v0 = vsel %vm784_vm0, %v744_v57, %v801_v60  ;;  %v771_v42 = vadd.f32 %v1842_v27, %v770_v39 }
 0x11f   : > { %vm795_vm7 = vcmp.ge.f32.partialorder %v771_v42, 0.0  ;;  %v812_v22 = vmul.f32 %v1851_v58, %v771_v42 }
 0x120   : > { %v745_v61 = vpop.f32.mrf.mxu1 }
 0x121   : > { %v746_v63 = vadd.f32 %v1842_v27, %v745_v61  ;;  %v828_v44 = vsel %vm795_vm7, %v771_v42, %v812_v22 }
 0x122   : > { %v1197_v46 = vpack.c.bf16 %v828_v44, %v827_v13 }
 0x123   : > { %vm785_vm1 = vcmp.ge.f32.partialorder %v746_v63, 0.0  ;;  %v802_v1 = vmul.f32 %v1851_v58, %v746_v63 }
 0x124   : > { %1213 = vst [vmem:[%s1861_s30 + $0x28] sm:$0xff] %v1197_v46  }
 0x125   : > { %v818_v6 = vsel %vm785_vm1, %v746_v63, %v802_v1 }
 0x126   : > { %v1172_v7 = vpack.c.bf16 %v818_v6, %v817_v0 }
 0x127   : > { %582 = vxpose.xlu0.c.b16.cont [5/8] %v574_v32, 128 }
 0x128   : > { %1173 = vst [vmem:[%s1861_s30] sm:$0xff] %v1172_v7   ;;  %v748_v14 = vpop.f32.mrf.mxu1 }
 0x129   : > { %v749_v19 = vadd.f32 %v1842_v27, %v748_v14 }
 0x12b   : > { %v803_v24 = vmul.f32 %v1851_v58, %v749_v19  ;;  %vm786_vm4 = vcmp.ge.f32.partialorder %v749_v19, 0.0 }
 0x12d   : > { %v819_v30 = vsel %vm786_vm4, %v749_v19, %v803_v24 }
 0x130   : > { %v750_v25 = vpop.f32.mrf.mxu1 }
 0x131   : > { %v751_v29 = vadd.f32 %v1842_v27, %v750_v25 }
 0x133   : > { %vm787_vm5 = vcmp.ge.f32.partialorder %v751_v29, 0.0  ;;  %v804_v32 = vmul.f32 %v1851_v58, %v751_v29 }
 0x135   : > { %v820_v16 = vsel %vm787_vm5, %v751_v29, %v804_v32 }
 0x136   : > { %v1177_v38 = vpack.c.bf16 %v820_v16, %v819_v30 }
 0x137   : > { %583 = vxpose.xlu0.c.b16.cont [6/8] %v575_v41, 128 }
 0x138   : > { %1209 = vst [vmem:[%s1861_s30 + $0x8] sm:$0xff] %v1177_v38   ;;  %v753_v43 = vpop.f32.mrf.mxu1 }
 0x139   : > { %v754_v45 = vadd.f32 %v1842_v27, %v753_v43 }
 0x13b   : > { %v805_v48 = vmul.f32 %v1851_v58, %v754_v45  ;;  %vm788_vm8 = vcmp.ge.f32.partialorder %v754_v45, 0.0 }
 0x13d   : > { %v821_v28 = vsel %vm788_vm8, %v754_v45, %v805_v48 }
 0x140   : > { %v755_v49 = vpop.f32.mrf.mxu1 }
 0x141   : > { %v756_v21 = vadd.f32 %v1842_v27, %v755_v49 }
 0x143   : > { %vm789_vm9 = vcmp.ge.f32.partialorder %v756_v21, 0.0  ;;  %v806_v52 = vmul.f32 %v1851_v58, %v756_v21 }
 0x147   : > { %584 = vxpose.xlu0.c.b16.cont [7/8] %v576_v47, 128  ;;  %v773_v47 = vpop.f32.mrf.mxu3 }
 0x148   : > { %v774_v50 = vadd.f32 %v1842_v27, %v773_v47  ;;  %v758_v60 = vpop.f32.mrf.mxu1 }
 0x149   : > { %v759_v0 = vadd.f32 %v1842_v27, %v758_v60 }
 0x14a   : > { %vm796_vm10 = vcmp.ge.f32.partialorder %v774_v50, 0.0 }
 0x14b   : > { %vm790_vm12 = vcmp.ge.f32.partialorder %v759_v0, 0.0 }
 0x14f   : > { %v775_v57 = vpop.f32.mrf.mxu3 }
 0x150   : > { %v776_v59 = vadd.f32 %v1842_v27, %v775_v57 }
 0x152   : > { %vm797_vm11 = vcmp.ge.f32.partialorder %v776_v59, 0.0  ;;  %v814_v62 = vmul.f32 %v1851_v58, %v776_v59 }
 0x154   : > { %v830_v63 = vsel %vm797_vm11, %v776_v59, %v814_v62 }
 0x157   : > { %585 = vxpose.xlu0.c.b16.end [8/8] %v577_v53, 128 }
 0x193   : > { %v586_v54 = vpop.trf.xlu0 }
 0x194   : > { %v602_v55 = vunpack.c.l.b16 %v586_v54  ;;  %v603_v33 = vunpack.c.h.b16 %v586_v54 }
 0x196   : > { %v618_v56 = vpack.c.b16 %v602_v55, %v602_v55  ;;  %v619_v31 = vpack.c.b16 %v603_v33, %v603_v33  ;;  %v813_v55 = vmul.f32 %v1851_v58, %v774_v50  ;;  %v822_v33 = vsel %vm789_vm9, %v756_v21, %v806_v52 }
 0x197   : > { %v1182_v35 = vpack.c.bf16 %v822_v33, %v821_v28 }
 0x198   : > { %650 = vst [vmem:[%s1846_s18] sm:$0xf] %v618_v56  ;;  %v829_v61 = vsel %vm796_vm10, %v774_v50, %v813_v55 }
 0x199   : > { %651 = vst [vmem:[%s1846_s18 + $0x4] sm:$0xf] %v619_v31  ;;  %v1202_v1 = vpack.c.bf16 %v830_v63, %v829_v61 }
 0x19a   : > { %1210 = vst [vmem:[%s1861_s30 + $0x10] sm:$0xff] %v1182_v35  }
 0x19b   : > { %1214 = vst [vmem:[%s1861_s30 + $0x30] sm:$0xff] %v1202_v1  }
 0x1a3   : > { %v587_v2 = vpop.trf.xlu0 }
 0x1a4   : > { %v604_v3 = vunpack.c.l.b16 %v587_v2  ;;  %v605_v4 = vunpack.c.h.b16 %v587_v2  ;;  %v778_v2 = vpop.f32.mrf.mxu3 }
 0x1a5   : > { %v779_v5 = vadd.f32 %v1842_v27, %v778_v2 }
 0x1a6   : > { %v620_v9 = vpack.c.b16 %v604_v3, %v604_v3  ;;  %v621_v11 = vpack.c.b16 %v605_v4, %v605_v4  ;;  %v807_v3 = vmul.f32 %v1851_v58, %v759_v0  ;;  %v760_v4 = vpop.f32.mrf.mxu1 }
 0x1a7   : > { %v761_v6 = vadd.f32 %v1842_v27, %v760_v4  ;;  %v815_v14 = vmul.f32 %v1851_v58, %v779_v5  ;;  %vm798_vm14 = vcmp.ge.f32.partialorder %v779_v5, 0.0 }
 0x1a8   : > { %652 = vst [vmem:[%s1846_s18 + $0x8] sm:$0xf] %v620_v9  ;;  %v823_v8 = vsel %vm790_vm12, %v759_v0, %v807_v3 }
 0x1a9   : > { %653 = vst [vmem:[%s1846_s18 + $0xc] sm:$0xf] %v621_v11  ;;  %vm791_vm13 = vcmp.ge.f32.partialorder %v761_v6, 0.0  ;;  %v808_v9 = vmul.f32 %v1851_v58, %v761_v6  ;;  %v831_v24 = vsel %vm798_vm14, %v779_v5, %v815_v14 }
 0x1ab   : > { %v824_v15 = vsel %vm791_vm13, %v761_v6, %v808_v9 }
 0x1ac   : > { %v1187_v19 = vpack.c.bf16 %v824_v15, %v823_v8  ;;  %v780_v20 = vpop.f32.mrf.mxu3 }
 0x1ad   : > { %v781_v23 = vadd.f32 %v1842_v27, %v780_v20 }
 0x1ae   : > { %1211 = vst [vmem:[%s1861_s30 + $0x18] sm:$0xff] %v1187_v19  }
 0x1af   : > { %vm799_vm15 = vcmp.ge.f32.partialorder %v781_v23, 0.0  ;;  %v816_v25 = vmul.f32 %v1851_v58, %v781_v23 }
 0x1b1   : > { %v832_v26 = vsel %vm799_vm15, %v781_v23, %v816_v25 }
 0x1b2   : > { %v1207_v29 = vpack.c.bf16 %v832_v26, %v831_v24 }
 0x1b3   : > { %v588_v34 = vpop.trf.xlu0 }
 0x1b4   : > { %v606_v36 = vunpack.c.l.b16 %v588_v34  ;;  %v607_v37 = vunpack.c.h.b16 %v588_v34  ;;  %1215 = vst [vmem:[%s1861_s30 + $0x38] sm:$0xff] %v1207_v29  }
 0x1b6   : > { %v622_v40 = vpack.c.b16 %v606_v36, %v606_v36  ;;  %v623_v41 = vpack.c.b16 %v607_v37, %v607_v37 }
 0x1b8   : > { %654 = vst [vmem:[%s1846_s18 + $0x10] sm:$0xf] %v622_v40 }
 0x1b9   : > { %655 = vst [vmem:[%s1846_s18 + $0x14] sm:$0xf] %v623_v41 }
 0x1c3   : > { %v589_v51 = vpop.trf.xlu0 }
 0x1c4   : > { %v608_v53 = vunpack.c.l.b16 %v589_v51  ;;  %v609_v54 = vunpack.c.h.b16 %v589_v51 }
 0x1c6   : > { %v624_v56 = vpack.c.b16 %v608_v53, %v608_v53  ;;  %v625_v31 = vpack.c.b16 %v609_v54, %v609_v54 }
 0x1c8   : > { %656 = vst [vmem:[%s1846_s18 + $0x18] sm:$0xf] %v624_v56 }
 0x1c9   : > { %657 = vst [vmem:[%s1846_s18 + $0x1c] sm:$0xf] %v625_v31 }
 0x1d3   : > { %v590_v7 = vpop.trf.xlu0 }
 0x1d4   : > { %v610_v11 = vunpack.c.l.b16 %v590_v7  ;;  %v611_v12 = vunpack.c.h.b16 %v590_v7 }
 0x1d6   : > { %v626_v17 = vpack.c.b16 %v610_v11, %v610_v11  ;;  %v627_v18 = vpack.c.b16 %v611_v12, %v611_v12 }
 0x1d8   : > { %658 = vst [vmem:[%s1846_s18 + $0x20] sm:$0xf] %v626_v17 }
 0x1d9   : > { %659 = vst [vmem:[%s1846_s18 + $0x24] sm:$0xf] %v627_v18 }
 0x1da   : > { %1470 = shalt.err (!%p1467_p0)
}
 0x1db   : > { %s1574_s16 = smov 64   ;;  %s1575_s30 = smov 4  }
 0x1dc   : > { %1247 = dma.vmem_to_hbm [thread:$0]  (%p1705_p3), %s904_s21, 1024, %s906_s8, %s871_s19, %s1574_s16, %s1574_s16, %s1575_s30  }
 0x1dd   : > { %s883_s20 = scalar_lea.hbm %s1980_s6, %s1167_s13  ;;  %s884_s21 = sshll.u32 %s1846_s18, 4  ;;  %s885_s21 = int_to_ptr.vmem [resolvable:$true] %s884_s21 }
 0x1de   : > { %s886_s8 = sshll.u32 %s883_s20, 4  ;;  %s866_s19 = scalar_lea.sflag [#allocation4], %s1737_s15  ;;  %s887_s8 = int_to_ptr.hbm [resolvable:$true] %s886_s8 }
 0x1df   : > { %s1485_s23 = sshra.s32 %s887_s8, 4  ;;  %s1491_s2 = scalar_lea.hbm %s1980_s6, 128  ;;  %s1486_s23 = int_to_ptr.hbm [resolvable:$true] %s1485_s23 }
 0x1e0   : > { %s1487_s27 = scalar_lea.hbm %s1486_s23, 64  ;;  %p1492_p2 = scmp.lt.s32.totalorder %s1486_s23, %s1980_s6 }
 0x1e1   : > { %p1488_p5 = scmp.ne.s32.totalorder %s1486_s23, %s1487_s27  ;;  %p1493_p1 = scmp.lt.s32.totalorder %s1491_s2, %s1487_s27 }
 0x1e3   : > { %v591_v27 = vpop.trf.xlu0  ;;  %p1489_p7 = pnand %p1488_p5, %p1705_p3  ;;  %p1494_p4 = por %p1493_p1, %p1492_p2 }
 0x1e4   : > { %v612_v58 = vunpack.c.l.b16 %v591_v27  ;;  %v613_v30 = vunpack.c.h.b16 %v591_v27 }
 0x1e5   : > { %p1490_p9 = pneg %p1489_p7 }
 0x1e6   : > { %v628_v32 = vpack.c.b16 %v612_v58, %v612_v58  ;;  %v629_v34 = vpack.c.b16 %v613_v30, %v613_v30 }
 0x1e7   : > { %p1495_p8 = pnand %p1494_p4, %p1490_p9 }
 0x1e8   : > { %660 = vst [vmem:[%s1846_s18 + $0x28] sm:$0xf] %v628_v32 }
 0x1e9   : > { %661 = vst [vmem:[%s1846_s18 + $0x2c] sm:$0xf] %v629_v34 }
 0x1f3   : > { %v592_v36 = vpop.trf.xlu0 }
 0x1f4   : > { %v614_v37 = vunpack.c.l.b16 %v592_v36  ;;  %v615_v10 = vunpack.c.h.b16 %v592_v36 }
 0x1f6   : > { %v630_v16 = vpack.c.b16 %v614_v37, %v614_v37  ;;  %v631_v38 = vpack.c.b16 %v615_v10, %v615_v10 }
 0x1f8   : > { %662 = vst [vmem:[%s1846_s18 + $0x30] sm:$0xf] %v630_v16 }
 0x1f9   : > { %663 = vst [vmem:[%s1846_s18 + $0x34] sm:$0xf] %v631_v38 }
 0x203   : > { %v593_v39 = vpop.trf.xlu0 }
 0x204   : > { %v616_v40 = vunpack.c.l.b16 %v593_v39  ;;  %v617_v41 = vunpack.c.h.b16 %v593_v39 }
 0x206   : > { %v632_v42 = vpack.c.b16 %v616_v40, %v616_v40  ;;  %v633_v43 = vpack.c.b16 %v617_v41, %v617_v41 }
 0x208   : > { %664 = vst [vmem:[%s1846_s18 + $0x38] sm:$0xf] %v632_v42 }
 0x209   : > { %665 = vst [vmem:[%s1846_s18 + $0x3c] sm:$0xf] %v633_v43 }
 0x20a   : > { %1498 = shalt.err (!%p1495_p8)
}
 0x20b   : > { %1246 = dma.vmem_to_hbm [thread:$0]  (%p1705_p3), %s885_s21, 1024, %s887_s8, %s866_s19, %s1574_s16, %s1574_s16, %s1575_s30  }
 0x20c PF: > { %s920_s18 = sand.u32 1, %s1545_s24   ;;  %p1265_p10 = pnand %p1065_p11, %p1665_p6 }
 0x20d   : > { %s921_s11 = scalar_lea.sflag [#allocation4], %s920_s18 }
 0x20e   : > { %p1266_p12 = pneg %p1265_p10 }
 0x210   : > { %1536 = dma.done.wait (%p1266_p12), %s921_s11, 1024  }
 0x211   : > { %1538 = vsyncadd (%p1266_p12), %s921_s11, 4294966272  ;;  %s931_s12 = scalar_lea.sflag [#allocation12], %s920_s18 }
 0x212   : > { %1540 = dma.done.wait (%p1266_p12), %s931_s12, 1024  }
 0x213   : > { %1542 = vsyncadd (%p1266_p12), %s931_s12, 4294966272  ;;  %s29_s29 = sadd.s32 1, %s1565_s29   ;;  %s2001_s22 = sld [smem:[#allocation19_spill]] }
 0x214   : > { %p26_p13 = scmp.ge.s32.totalorder %s29_s29, 4   ;;  %s2002_s24 = smov %s1549_s25 }
 0x215   : > { %s2003_s25 = smov %s1553_s26  ;;  %s2004_s26 = smov %s1721_s10 }
 0x216   : > { %s2005_s27 = smov %s1561_s28  ;;  %28 = sbr.rel (!%p26_p13) target bundleno = 14 (0xe), region = 119 }
 0x219   : > { %s2006_s28 = smov %s2001_s22 }
 0x21b   :  { %937 = vsyncpa [#allocation3], 1 }
 0x21c   :  { %939 = vsyncpa [#allocation3 + $0x1], 1 }
 0x21d   :  { %940 = vsyncpa [#allocation8], 1 }
 0x21e   :  { %941 = vsyncpa [#allocation4], 1 }
 0x21f   :  { %943 = vsyncpa [#allocation4 + $0x1], 1 }
 0x220   :  { %944 = vsyncpa [#allocation12], 1 }
 0x221   :  { %946 = vsyncpa [#allocation12 + $0x1], 1 }
 0x222   :  { %947 = vsyncpa [#allocation5], 1 }
 0x223   :  { %949 = vsyncpa [#allocation5 + $0x1], 1 }

// kernel: tpu_custom_call.1
= control target key start
LH: loop header
LB: loop body
LE: loop exit
PB: predicated region body
PF: predicated region fallthrough
CT: control target
= control target key end

     0   :  { %s1974_s0 = inlined_call_operand.hbm [shape: f32[3], index: 0, kind: input, shape index: {}]   ;;  %s1975_s1 = inlined_call_operand.hbm [shape: f32[2,128,128], index: 1, kind: input, shape index: {}]   ;;  %s1976_s2 = inlined_call_operand.hbm [shape: bf16[128,128], index: 2, kind: input, shape index: {}]   ;;  %s1977_s3 = inlined_call_operand.vmem [shape: f32[1,128], index: 3, kind: input, shape index: {}]   ;;  %s1978_s4 = inlined_call_operand.hbm [shape: bf16[128,128], index: 4, kind: input, shape index: {}]   ;;  %s1979_s5 = inlined_call_operand.vmem [shape: f32[1,128], index: 5, kind: input, shape index: {}]   ;;  %s1980_s6 = inlined_call_operand.hbm [shape: bf16[2,128,128], index: 6, kind: output, shape index: {0}]   ;;  %s1981_s7 = inlined_call_operand.hbm [shape: bf16[2,128,128], index: 7, kind: output, shape index: {1}]  }
   0x1   :  { %1984 = sst [smem:[#allocation20_spill]] %s1974_s0 }
   0x2   :  { %1985 = sst [smem:[#allocation21_spill]] %s1976_s2 }
   0x3   :  { %1986 = sst [smem:[#allocation22_spill]] %s1978_s4 }
   0x4   :  { %13 = vsyncpa [#allocation5], 0 }
   0x5   :  { %14 = vsyncpa [#allocation3], 0 }
   0x6   :  { %16 = vsyncpa [#allocation3 + $0x1], 0 }
   0x7   :  { %17 = vsyncpa [#allocation8], 0 }
   0x8   :  { %18 = vsyncpa [#allocation4], 0 }
   0x9   :  { %20 = vsyncpa [#allocation4 + $0x1], 0 }
   0xa   :  { %21 = vsyncpa [#allocation12], 0 }
   0xb   :  { %23 = vsyncpa [#allocation12 + $0x1], 0  ;;  %s1616_s24 = smov 0   ;;  %s1618_s25 = smov 0  }
   0xc   :  { %s1620_s26 = smov 0   ;;  %s1622_s27 = smov 0  }
   0xd   :  { %s1624_s28 = smov 0   ;;  %s1626_s29 = smov 0  }
   0xe LB: > { %s1059_s30 = sadd.s32 4294967295, %s1565_s29   ;;  %s1060_s8 = sadd.s32 4294967294, %s1565_s29   ;;  %s1565_s29 = sphi %s1626_s29, %s29_s29   ;;  %s1561_s28 = sphi %s1624_s28, %s2006_s28   ;;  %s1557_s27 = sphi %s1622_s27, %s2005_s27   ;;  %s1553_s26 = sphi %s1620_s26, %s2004_s26   ;;  %s1549_s25 = sphi %s1618_s25, %s2003_s25   ;;  %s1545_s24 = sphi %s1616_s24, %s2002_s24  }
   0xf   : > { %p84_p0 = scmp.ne.s32.totalorder %s1549_s25, %s1545_s24  ;;  %p1650_p1 = scmp.eq.s32.totalorder %s1059_s30, 0 }
  0x10   : > { %p1654_p2 = scmp.eq.s32.totalorder %s1059_s30, 1  ;;  %p200_p3 = scmp.eq.s32.totalorder %s1060_s8, 1 }
  0x11   : > { %p1660_p4 = por %p1650_p1, %p84_p0  ;;  %p1061_p5 = scmp.ge.s32.totalorder %s1565_s29, 1 }
  0x12   : > { %p1665_p6 = por %p200_p3, %p84_p0  ;;  %p235_p7 = scmp.lt.s32.totalorder %s1565_s29, 3 }
  0x13   : > { %s1992_s2 = sld [smem:[#allocation21_spill]]  ;;  %s1567_s17 = smov [#allocation7]  }
  0x14   : > { %s1990_s12 = scalar_select %p1665_p6, 1, 0 }
  0x15   : > { %p1673_p8 = pnand %p1061_p5, %p235_p7  ;;  %s258_s18 = sshll.u32 %s1567_s17, 4  ;;  %s259_s18 = int_to_ptr.vmem [resolvable:$true] %s258_s18 }
  0x16   : > { %1991 = sst [smem:[#allocation18_spill]] %s1990_s12  ;;  %p1065_p11 = scmp.ge.s32.totalorder %s1565_s29, 2 }
  0x17   : > { %p1250_p9 = pneg %p1673_p8  ;;  %s1995_s0 = sld [smem:[#allocation20_spill]] }
  0x18   : > { %s1568_s23 = smov 64   ;;  %s1569_s30 = smov 4  }
  0x19   : > { %s256_s15 = sshll.u32 %s1992_s2, 4  ;;  %p1681_p10 = pnand %p1250_p9, %p1650_p1  ;;  %s257_s15 = int_to_ptr.hbm [resolvable:$true] %s256_s15 }
  0x1a   : > { %s1570_s8 = smov [#allocation2]   ;;  %s1996_s4 = sld [smem:[#allocation22_spill]] }
  0x1b   : > { %1256 = dma.hbm_to_vmem [thread:$0]  (!%p1681_p10), %s257_s15, 1024, %s259_s18, [#allocation8], %s1568_s23, %s1568_s23, %s1569_s30  }
  0x1c   : > { %s1571_s20 = smov [#allocation9]   ;;  %s71_s15 = sadd.s32 1, %s1553_s26 }
  0x1d   : > { %s247_s22 = sshll.u32 %s1995_s0, 4  ;;  %s275_s21 = sshll.u32 %s1571_s20, 4  ;;  %s248_s22 = int_to_ptr.hbm [resolvable:$true] %s247_s22  ;;  %s276_s21 = int_to_ptr.vmem [resolvable:$true] %s275_s21 }
  0x1e   : > { %1253 = dma.hbm_to_smem (!%p1681_p10), %s248_s22, 16, %s1570_s8, [#allocation5]  }
  0x1f   : > { %s41_s18 = sadd.s32 1, %s1561_s28  ;;  %p78_p12 = scmp.ne.s32.totalorder %s1553_s26, %s1549_s25 }
  0x20   : > { %s273_s17 = sshll.u32 %s1996_s4, 4  ;;  %p43_p13 = scmp.ge.s32.totalorder %s41_s18, 2  ;;  %s274_s17 = int_to_ptr.hbm [resolvable:$true] %s273_s17 }
  0x21   : > { %1259 = dma.hbm_to_vmem [thread:$0]  (!%p1681_p10), %s274_s17, 1024, %s276_s21, [#allocation8], %s1568_s23, %s1568_s23, %s1569_s30  }
  0x22   : > { %p79_p0 = scmp.eq.s32.totalorder %s1565_s29, 0  ;;  %p1705_p3 = por %p1654_p2, %p78_p12 }
  0x23   : > { %p1274_p5 = scmp.lt.s32.totalorder %s1565_s29, 2  ;;  %s2008_s18 = smov (%p43_p13, %s41_s18), 0 }
  0x24   : > { %1998 = sst [smem:[#allocation19_spill]] %s2008_s18  ;;  %p1712_p7 = por %p79_p0, %p78_p12 }
  0x25   : > { %s292_s19 = sand.u32 1, %s1553_s26   ;;  %s66_s23 = ssub.s32 %s1561_s28, %s2008_s18 }
  0x26   : > { %p69_p9 = scmp.eq.s32.totalorder %s66_s23, 0  ;;  %s1066_s30 = sshll.u32 %s292_s19, 7 }
  0x27   : > { %s1150_s13 = sshll.u32 %s1561_s28, 7  ;;  %s296_s21 = scalar_lea.vmem [#allocation6], %s1066_s30 }
  0x28   : > { %s1721_s10 = scalar_select %p69_p9, %s1553_s26, %s71_s15  }
  0x29   : > { %s303_s20 = scalar_lea.hbm %s1975_s1, %s1150_s13  ;;  %s306_s0 = sshll.u32 %s296_s21, 4  ;;  %s307_s0 = int_to_ptr.vmem [resolvable:$true] %s306_s0 }
  0x2a   : > { %s304_s2 = sshll.u32 %s303_s20, 4  ;;  %p1261_p2 = pnand %p1274_p5, %p1712_p7  ;;  %s305_s2 = int_to_ptr.hbm [resolvable:$true] %s304_s2 }
  0x2b   : > { %s293_s4 = scalar_lea.sflag [#allocation3], %s292_s19  ;;  %s1572_s12 = smov 128  }
  0x2c   : > { %s1573_s18 = smov 8   ;;  %318 = sbr.rel (%p1673_p8) target bundleno = 524 (0x20c), region = 44 }
  0x2d   : > { %1263 = dma.hbm_to_vmem [thread:$0]  (!%p1261_p2), %s305_s2, 2048, %s307_s0, %s293_s4, %s1572_s12, %s1572_s12, %s1573_s18  }
  0x31   : > { %1524 = dma.done.wait (%p1650_p1), [#allocation5], 16  }
  0x32   : > { %1526 = vsyncadd (%p1650_p1), [#allocation5], 4294967280  ;;  %s1737_s15 = sand.u32 1, %s1549_s25  }
  0x33   : > { %s1071_s8 = sshll.u32 %s1737_s15, 7  ;;  %s326_s19 = scalar_lea.sflag [#allocation3], %s1737_s15 }
  0x34   : > { %s1741_s23 = scalar_lea.vmem [#allocation6], %s1071_s8 }
  0x35   : > { %1528 = dma.done.wait (%p1660_p4), %s326_s19, 2048  }
  0x36   : > { %1530 = vsyncadd (%p1660_p4), %s326_s19, 4294965248 }
  0x37   : > { %1532 = dma.done.wait (%p1650_p1), [#allocation8], 2048  }
  0x38   : > { %1534 = vsyncadd (%p1650_p1), [#allocation8], 4294965248 }
  0x39   : > { %345 = sfence }
  0x3a   : > { %v1158_v0 = vld [vmem:[#allocation7 + $0x38] sm:$0xff]  ;;  %v1157_v1 = vld [vmem:[#allocation7 + $0x30] sm:$0xff]  ;;  %v1156_v2 = vld [vmem:[#allocation7 + $0x28] sm:$0xff]  ;;  %s1108_s0 = sld [smem:[#allocation2 + $0x1]]  ;;  %s1074_s11 = sshll.u32 %s1737_s15, 6 }
  0x3b   : > { %471 = vmatpush.bf16.msra.mxu0 %v1158_v0  ;;  %1216 = vmatpush.bf16.msra.mxu2 %v1158_v0  ;;  %v1155_v3 = vld [vmem:[#allocation7 + $0x20] sm:$0xff]  ;;  %v1154_v4 = vld [vmem:[#allocation7 + $0x18] sm:$0xff]  ;;  %v1153_v5 = vld [vmem:[#allocation7 + $0x10] sm:$0xff]  ;;  %s1141_s9 = sld [smem:[#allocation2 + $0x2]]  ;;  %s1846_s18 = scalar_lea.vmem [#allocation10], %s1074_s11 }
  0x3c   : > { %v1152_v6 = vld [vmem:[#allocation7 + $0x8] sm:$0xff]  ;;  %v1151_v7 = vld [vmem:[#allocation7] sm:$0xff]  ;;  %v381_v11 = vld [vmem:[%s1741_s23 + $0x10] sm:$0xff]  ;;  %s1861_s30 = scalar_lea.vmem [#allocation11], %s1074_s11  ;;  %s1167_s13 = sshll.u32 %s1557_s27, 6 }
  0x3d   : > { %v379_v8 = vld [vmem:[%s1741_s23] sm:$0xff]  ;;  %v380_v9 = vld [vmem:[%s1741_s23 + $0x8] sm:$0xff]  ;;  %v382_v12 = vld [vmem:[%s1741_s23 + $0x18] sm:$0xff]  ;;  %s902_s20 = scalar_lea.hbm %s1981_s7, %s1167_s13  ;;  %s903_s21 = sshll.u32 %s1861_s30, 4  ;;  %s904_s21 = int_to_ptr.vmem [resolvable:$true] %s903_s21 }
  0x3e   : > { %v1753_v10 = vpack.c.bf16 %v380_v9, %v379_v8  ;;  %v1758_v13 = vpack.c.bf16 %v382_v12, %v381_v11  ;;  %v387_v14 = vld [vmem:[%s1741_s23 + $0x40] sm:$0xff]  ;;  %v388_v15 = vld [vmem:[%s1741_s23 + $0x48] sm:$0xff]  ;;  %v389_v19 = vld [vmem:[%s1741_s23 + $0x50] sm:$0xff]  ;;  %s905_s8 = sshll.u32 %s902_s20, 4  ;;  %s871_s19 = scalar_lea.sflag [#allocation12], %s1737_s15  ;;  %s906_s8 = int_to_ptr.hbm [resolvable:$true] %s905_s8 }
  0x3f   : > { %472 = vmatpush.bf16.msra.mxu0 %v1157_v1  ;;  %1217 = vmatpush.bf16.msra.mxu2 %v1157_v1  ;;  %v1762_v16 = vpack.c.bf16 %v388_v15, %v387_v14  ;;  %v383_v17 = vld [vmem:[%s1741_s23 + $0x20] sm:$0xff]  ;;  %v384_v18 = vld [vmem:[%s1741_s23 + $0x28] sm:$0xff]  ;;  %v390_v20 = vld [vmem:[%s1741_s23 + $0x58] sm:$0xff] }
  0x40   : > { %v1770_v21 = vpack.c.bf16 %v384_v18, %v383_v17  ;;  %v1772_v22 = vpack.c.bf16 %v390_v20, %v389_v19  ;;  %v385_v23 = vld [vmem:[%s1741_s23 + $0x30] sm:$0xff]  ;;  %v386_v24 = vld [vmem:[%s1741_s23 + $0x38] sm:$0xff]  ;;  %v391_v25 = vld [vmem:[%s1741_s23 + $0x60] sm:$0xff]  ;;  %v1797_v35 = vstv %s1108_s0 }
  0x41   : > { %v392_v26 = vld [vmem:[%s1741_s23 + $0x68] sm:$0xff]  ;;  %v1780_v27 = vpack.c.bf16 %v386_v24, %v385_v23  ;;  %v393_v29 = vld [vmem:[%s1741_s23 + $0x70] sm:$0xff]  ;;  %v394_v30 = vld [vmem:[%s1741_s23 + $0x78] sm:$0xff]  ;;  %s1457_s23 = sshra.s32 %s906_s8, 4  ;;  %s1458_s23 = int_to_ptr.hbm [resolvable:$true] %s1457_s23 }
  0x42   : > { %v1782_v28 = vpack.c.bf16 %v392_v26, %v391_v25  ;;  %v1788_v31 = vpack.c.bf16 %v394_v30, %v393_v29  ;;  %v1794_v33 = vld [vmem:[%s1977_s3] ss:$0 sm:$0xff]  ;;  %v1166_v53 = vld [vmem:[#allocation9 + $0x38] sm:$0xff]  ;;  %v1165_v54 = vld [vmem:[#allocation9 + $0x30] sm:$0xff]  ;;  %s1459_s0 = scalar_lea.hbm %s1458_s23, 64  ;;  %p1464_p10 = scmp.lt.s32.totalorder %s1458_s23, %s1981_s7 }
  0x43   : > { %473 = vmatpush.bf16.msra.mxu0 %v1156_v2  ;;  %1218 = vmatpush.bf16.msra.mxu2 %v1156_v2  ;;  %v1164_v56 = vld [vmem:[#allocation9 + $0x28] sm:$0xff]  ;;  %v1163_v1 = vld [vmem:[#allocation9 + $0x20] sm:$0xff]  ;;  %p1460_p1 = scmp.ne.s32.totalorder %s1458_s23, %s1459_s0 }
  0x44   : > { %1224 = vmatpush.bf16.msra.mxu3 %v1166_v53  ;;  %734 = vmatpush.bf16.msra.mxu1 %v1166_v53  ;;  %v1160_v11 = vld [vmem:[#allocation9 + $0x8] sm:$0xff]  ;;  %v1159_v19 = vld [vmem:[#allocation9] sm:$0xff] }
  0x45   : > { %p1461_p4 = pnand %p1460_p1, %p1705_p3 }
  0x47   : > { %474 = vmatpush.bf16.msra.mxu0 %v1155_v3  ;;  %1219 = vmatpush.bf16.msra.mxu2 %v1155_v3  ;;  %v1162_v3 = vld [vmem:[#allocation9 + $0x18] sm:$0xff]  ;;  %p1462_p8 = pneg %p1461_p4 }
  0x48   : > { %1225 = vmatpush.bf16.msra.mxu3 %v1165_v54  ;;  %735 = vmatpush.bf16.msra.mxu1 %v1165_v54 }
  0x4b   : > { %475 = vmatpush.bf16.msra.mxu0 %v1154_v4  ;;  %1220 = vmatpush.bf16.msra.mxu2 %v1154_v4 }
  0x4c   : > { %1226 = vmatpush.bf16.msra.mxu3 %v1164_v56  ;;  %736 = vmatpush.bf16.msra.mxu1 %v1164_v56 }
  0x4f   : > { %476 = vmatpush.bf16.msra.mxu0 %v1153_v5  ;;  %1221 = vmatpush.bf16.msra.mxu2 %v1153_v5 }
  0x50   : > { %1227 = vmatpush.bf16.msra.mxu3 %v1163_v1  ;;  %737 = vmatpush.bf16.msra.mxu1 %v1163_v1 }
  0x53   : > { %477 = vmatpush.bf16.msra.mxu0 %v1152_v6  ;;  %1222 = vmatpush.bf16.msra.mxu2 %v1152_v6  ;;  %v1161_v6 = vld [vmem:[#allocation9 + $0x10] sm:$0xff] }
  0x54   : > { %1228 = vmatpush.bf16.msra.mxu3 %v1162_v3  ;;  %738 = vmatpush.bf16.msra.mxu1 %v1162_v3 }
  0x57   : > { %478 = vmatpush.bf16.msra.mxu0 %v1151_v7  ;;  %1223 = vmatpush.bf16.msra.mxu2 %v1151_v7 }
  0x58   : > { %1229 = vmatpush.bf16.msra.mxu3 %v1161_v6  ;;  %739 = vmatpush.bf16.msra.mxu1 %v1161_v6 }
  0x5a   : > { %479 = vmatmul.bf16.vlgmr.msra.gmra.mxu0 %v1753_v10  ;;  %499 = vmatmul.bf16.vlgmr.msra.gmra.mxu2 %v1762_v16 }
  0x5c   : > { %1230 = vmatpush.bf16.msra.mxu3 %v1160_v11  ;;  %740 = vmatpush.bf16.msra.mxu1 %v1160_v11 }
  0x60   : > { %1231 = vmatpush.bf16.msra.mxu3 %v1159_v19  ;;  %741 = vmatpush.bf16.msra.mxu1 %v1159_v19 }
  0x63   : > { %762 = vmatmul.bf16.vlgmr.msra.gmra.mxu3 %v1762_v16  ;;  %742 = vmatmul.bf16.vlgmr.msra.gmra.mxu1 %v1753_v10 }
  0x6a   : > { %484 = vmatmul.bf16.gmra.mxu0 %v1758_v13  ;;  %504 = vmatmul.bf16.gmra.mxu2 %v1772_v22 }
  0x73   : > { %767 = vmatmul.bf16.gmra.mxu3 %v1772_v22  ;;  %747 = vmatmul.bf16.gmra.mxu1 %v1758_v13 }
  0x7a   : > { %489 = vmatmul.bf16.gmra.mxu0 %v1770_v21  ;;  %509 = vmatmul.bf16.gmra.mxu2 %v1782_v28 }
  0x83   : > { %772 = vmatmul.bf16.gmra.mxu3 %v1782_v28  ;;  %752 = vmatmul.bf16.gmra.mxu1 %v1770_v21 }
  0x8a   : > { %494 = vmatmul.bf16.gmra.mxu0 %v1780_v27  ;;  %514 = vmatmul.bf16.gmra.mxu2 %v1788_v31 }
  0x93   : > { %777 = vmatmul.bf16.gmra.mxu3 %v1788_v31  ;;  %757 = vmatmul.bf16.gmra.mxu1 %v1780_v27  ;;  %v1842_v27 = vld [vmem:[%s1979_s5] ss:$0 sm:$0xff] }
  0xd7   : > { %v480_v32 = vpop.f32.mrf.mxu0 }
  0xd8   : > { %v481_v34 = vadd.f32 %v1794_v33, %v480_v32 }
  0xda   : > { %v538_v37 = vmul.f32 %v1797_v35, %v481_v34  ;;  %vm521_vm0 = vcmp.ge.f32.partialorder %v481_v34, 0.0 }
  0xdc   : > { %v554_v40 = vsel %vm521_vm0, %v481_v34, %v538_v37 }
  0xdd   : > { %v500_v60 = vpop.f32.mrf.mxu2 }
  0xde   : > { %v501_v20 = vadd.f32 %v1794_v33, %v500_v60 }
  0xdf   : > { %v482_v36 = vpop.f32.mrf.mxu0 }
  0xe0   : > { %v483_v38 = vadd.f32 %v1794_v33, %v482_v36  ;;  %v546_v24 = vmul.f32 %v1797_v35, %v501_v20  ;;  %vm529_vm8 = vcmp.ge.f32.partialorder %v501_v20, 0.0 }
  0xe2   : > { %v539_v39 = vmul.f32 %v1797_v35, %v483_v38  ;;  %vm522_vm1 = vcmp.ge.f32.partialorder %v483_v38, 0.0  ;;  %v562_v29 = vsel %vm529_vm8, %v501_v20, %v546_v24 }
  0xe4   : > { %v555_v41 = vsel %vm522_vm1, %v483_v38, %v539_v39 }
  0xe5   : > { %v570_v42 = vpack.c.bf16 %v555_v41, %v554_v40  ;;  %v502_v4 = vpop.f32.mrf.mxu2 }
  0xe6   : > { %v503_v23 = vadd.f32 %v1794_v33, %v502_v4 }
  0xe7   : > { %v485_v43 = vpop.f32.mrf.mxu0  ;;  %578 = vxpose.xlu0.c.b16.start [1/8] %v570_v42, 128 }
  0xe8   : > { %v486_v44 = vadd.f32 %v1794_v33, %v485_v43  ;;  %v547_v25 = vmul.f32 %v1797_v35, %v503_v23  ;;  %vm530_vm9 = vcmp.ge.f32.partialorder %v503_v23, 0.0 }
  0xea   : > { %v540_v46 = vmul.f32 %v1797_v35, %v486_v44  ;;  %vm523_vm2 = vcmp.ge.f32.partialorder %v486_v44, 0.0  ;;  %v563_v30 = vsel %vm530_vm9, %v503_v23, %v547_v25 }
  0xeb   : > { %v574_v32 = vpack.c.bf16 %v563_v30, %v562_v29 }
  0xec   : > { %v556_v49 = vsel %vm523_vm2, %v486_v44, %v540_v46 }
  0xed   : > { %v505_v18 = vpop.f32.mrf.mxu2 }
  0xee   : > { %v506_v36 = vadd.f32 %v1794_v33, %v505_v18 }
  0xef   : > { %v487_v45 = vpop.f32.mrf.mxu0 }
  0xf0   : > { %v488_v47 = vadd.f32 %v1794_v33, %v487_v45  ;;  %v548_v10 = vmul.f32 %v1797_v35, %v506_v36  ;;  %vm531_vm10 = vcmp.ge.f32.partialorder %v506_v36, 0.0 }
  0xf2   : > { %v541_v48 = vmul.f32 %v1797_v35, %v488_v47  ;;  %vm524_vm3 = vcmp.ge.f32.partialorder %v488_v47, 0.0  ;;  %v564_v38 = vsel %vm531_vm10, %v506_v36, %v548_v10 }
  0xf4   : > { %v557_v50 = vsel %vm524_vm3, %v488_v47, %v541_v48 }
  0xf5   : > { %v571_v51 = vpack.c.bf16 %v557_v50, %v556_v49  ;;  %v507_v26 = vpop.f32.mrf.mxu2 }
  0xf6   : > { %v508_v37 = vadd.f32 %v1794_v33, %v507_v26 }
  0xf7   : > { %v490_v52 = vpop.f32.mrf.mxu0  ;;  %579 = vxpose.xlu0.c.b16.cont [2/8] %v571_v51, 128 }
  0xf8   : > { %v491_v55 = vadd.f32 %v1794_v33, %v490_v52  ;;  %v549_v16 = vmul.f32 %v1797_v35, %v508_v37  ;;  %vm532_vm11 = vcmp.ge.f32.partialorder %v508_v37, 0.0 }
  0xfa   : > { %v542_v58 = vmul.f32 %v1797_v35, %v491_v55  ;;  %vm525_vm4 = vcmp.ge.f32.partialorder %v491_v55, 0.0  ;;  %v565_v39 = vsel %vm532_vm11, %v508_v37, %v549_v16 }
  0xfb   : > { %v575_v41 = vpack.c.bf16 %v565_v39, %v564_v38 }
  0xfc   : > { %v558_v62 = vsel %vm525_vm4, %v491_v55, %v542_v58  ;;  %v1851_v58 = vstv %s1141_s9  ;;  %s1463_s9 = scalar_lea.hbm %s1981_s7, 128 }
  0xfd   : > { %v510_v34 = vpop.f32.mrf.mxu2  ;;  %p1465_p12 = scmp.lt.s32.totalorder %s1463_s9, %s1459_s0 }
  0xfe   : > { %v511_v42 = vadd.f32 %v1794_v33, %v510_v34 }
  0xff   : > { %v492_v57 = vpop.f32.mrf.mxu0  ;;  %p1466_p13 = por %p1465_p12, %p1464_p10 }
 0x100   : > { %v493_v59 = vadd.f32 %v1794_v33, %v492_v57  ;;  %v550_v22 = vmul.f32 %v1797_v35, %v511_v42  ;;  %vm533_vm12 = vcmp.ge.f32.partialorder %v511_v42, 0.0 }
 0x101   : > { %p1467_p0 = pnand %p1466_p13, %p1462_p8 }
 0x102   : > { %v543_v61 = vmul.f32 %v1797_v35, %v493_v59  ;;  %vm526_vm5 = vcmp.ge.f32.partialorder %v493_v59, 0.0  ;;  %v566_v45 = vsel %vm533_vm12, %v511_v42, %v550_v22 }
 0x104   : > { %v559_v63 = vsel %vm526_vm5, %v493_v59, %v543_v61  ;;  %v763_v59 = vpop.f32.mrf.mxu3 }
 0x105   : > { %v572_v0 = vpack.c.bf16 %v559_v63, %v558_v62  ;;  %v512_v40 = vpop.f32.mrf.mxu2  ;;  %v764_v62 = vadd.f32 %v1842_v27, %v763_v59 }
 0x106   : > { %v513_v43 = vadd.f32 %v1794_v33, %v512_v40 }
 0x107   : > { %v495_v2 = vpop.f32.mrf.mxu0  ;;  %580 = vxpose.xlu0.c.b16.cont [3/8] %v572_v0, 128  ;;  %vm792_vm2 = vcmp.ge.f32.partialorder %v764_v62, 0.0 }
 0x108   : > { %v496_v5 = vadd.f32 %v1794_v33, %v495_v2  ;;  %v551_v44 = vmul.f32 %v1797_v35, %v513_v43  ;;  %vm534_vm13 = vcmp.ge.f32.partialorder %v513_v43, 0.0 }
 0x10a   : > { %v544_v8 = vmul.f32 %v1797_v35, %v496_v5  ;;  %vm527_vm6 = vcmp.ge.f32.partialorder %v496_v5, 0.0  ;;  %v567_v46 = vsel %vm534_vm13, %v513_v43, %v551_v44 }
 0x10b   : > { %v576_v47 = vpack.c.bf16 %v567_v46, %v566_v45 }
 0x10c   : > { %v560_v14 = vsel %vm527_vm6, %v496_v5, %v544_v8  ;;  %v809_v5 = vmul.f32 %v1851_v58, %v764_v62  ;;  %v765_v8 = vpop.f32.mrf.mxu3 }
 0x10d   : > { %v515_v13 = vpop.f32.mrf.mxu2 }
 0x10e   : > { %v516_v49 = vadd.f32 %v1794_v33, %v515_v13 }
 0x10f   : > { %v497_v7 = vpop.f32.mrf.mxu0 }
 0x110   : > { %v498_v9 = vadd.f32 %v1794_v33, %v497_v7  ;;  %v552_v21 = vmul.f32 %v1797_v35, %v516_v49  ;;  %vm535_vm14 = vcmp.ge.f32.partialorder %v516_v49, 0.0 }
 0x112   : > { %v545_v12 = vmul.f32 %v1797_v35, %v498_v9  ;;  %vm528_vm7 = vcmp.ge.f32.partialorder %v498_v9, 0.0  ;;  %v568_v51 = vsel %vm535_vm14, %v516_v49, %v552_v21 }
 0x114   : > { %v561_v15 = vsel %vm528_vm7, %v498_v9, %v545_v12  ;;  %v766_v12 = vadd.f32 %v1842_v27, %v765_v8  ;;  %v768_v23 = vpop.f32.mrf.mxu3 }
 0x115   : > { %v573_v17 = vpack.c.bf16 %v561_v15, %v560_v14  ;;  %v517_v48 = vpop.f32.mrf.mxu2  ;;  %v825_v15 = vsel %vm792_vm2, %v764_v62, %v809_v5  ;;  %v769_v26 = vadd.f32 %v1842_v27, %v768_v23 }
 0x116   : > { %v518_v50 = vadd.f32 %v1794_v33, %v517_v48  ;;  %vm793_vm3 = vcmp.ge.f32.partialorder %v766_v12, 0.0 }
 0x117   : > { %581 = vxpose.xlu0.c.b16.cont [4/8] %v573_v17, 128  ;;  %v810_v17 = vmul.f32 %v1851_v58, %v766_v12  ;;  %v811_v10 = vmul.f32 %v1851_v58, %v769_v26  ;;  %vm794_vm6 = vcmp.ge.f32.partialorder %v769_v26, 0.0 }
 0x118   : > { %v553_v28 = vmul.f32 %v1797_v35, %v518_v50  ;;  %vm536_vm15 = vcmp.ge.f32.partialorder %v518_v50, 0.0  ;;  %v743_v35 = vpop.f32.mrf.mxu1 }
 0x119   : > { %v744_v57 = vadd.f32 %v1842_v27, %v743_v35  ;;  %v826_v18 = vsel %vm793_vm3, %v766_v12, %v810_v17  ;;  %v827_v13 = vsel %vm794_vm6, %v769_v26, %v811_v10 }
 0x11a   : > { %v569_v52 = vsel %vm536_vm15, %v518_v50, %v553_v28  ;;  %v1192_v20 = vpack.c.bf16 %v826_v18, %v825_v15 }
 0x11b   : > { %v577_v53 = vpack.c.bf16 %v569_v52, %v568_v51  ;;  %v801_v60 = vmul.f32 %v1851_v58, %v744_v57  ;;  %vm784_vm0 = vcmp.ge.f32.partialorder %v744_v57, 0.0 }
 0x11c   : > { %1212 = vst [vmem:[%s1861_s30 + $0x20] sm:$0xff] %v1192_v20   ;;  %v770_v39 = vpop.f32.mrf.mxu3 }
 0x11d   : > { %v817_v0 = vsel %vm784_vm0, %v744_v57, %v801_v60  ;;  %v771_v42 = vadd.f32 %v1842_v27, %v770_v39 }
 0x11f   : > { %vm795_vm7 = vcmp.ge.f32.partialorder %v771_v42, 0.0  ;;  %v812_v22 = vmul.f32 %v1851_v58, %v771_v42 }
 0x120   : > { %v745_v61 = vpop.f32.mrf.mxu1 }
 0x121   : > { %v746_v63 = vadd.f32 %v1842_v27, %v745_v61  ;;  %v828_v44 = vsel %vm795_vm7, %v771_v42, %v812_v22 }
 0x122   : > { %v1197_v46 = vpack.c.bf16 %v828_v44, %v827_v13 }
 0x123   : > { %vm785_vm1 = vcmp.ge.f32.partialorder %v746_v63, 0.0  ;;  %v802_v1 = vmul.f32 %v1851_v58, %v746_v63 }
 0x124   : > { %1213 = vst [vmem:[%s1861_s30 + $0x28] sm:$0xff] %v1197_v46  }
 0x125   : > { %v818_v6 = vsel %vm785_vm1, %v746_v63, %v802_v1 }
 0x126   : > { %v1172_v7 = vpack.c.bf16 %v818_v6, %v817_v0 }
 0x127   : > { %582 = vxpose.xlu0.c.b16.cont [5/8] %v574_v32, 128 }
 0x128   : > { %1173 = vst [vmem:[%s1861_s30] sm:$0xff] %v1172_v7   ;;  %v748_v14 = vpop.f32.mrf.mxu1 }
 0x129   : > { %v749_v19 = vadd.f32 %v1842_v27, %v748_v14 }
 0x12b   : > { %v803_v24 = vmul.f32 %v1851_v58, %v749_v19  ;;  %vm786_vm4 = vcmp.ge.f32.partialorder %v749_v19, 0.0 }
 0x12d   : > { %v819_v30 = vsel %vm786_vm4, %v749_v19, %v803_v24 }
 0x130   : > { %v750_v25 = vpop.f32.mrf.mxu1 }
 0x131   : > { %v751_v29 = vadd.f32 %v1842_v27, %v750_v25 }
 0x133   : > { %vm787_vm5 = vcmp.ge.f32.partialorder %v751_v29, 0.0  ;;  %v804_v32 = vmul.f32 %v1851_v58, %v751_v29 }
 0x135   : > { %v820_v16 = vsel %vm787_vm5, %v751_v29, %v804_v32 }
 0x136   : > { %v1177_v38 = vpack.c.bf16 %v820_v16, %v819_v30 }
 0x137   : > { %583 = vxpose.xlu0.c.b16.cont [6/8] %v575_v41, 128 }
 0x138   : > { %1209 = vst [vmem:[%s1861_s30 + $0x8] sm:$0xff] %v1177_v38   ;;  %v753_v43 = vpop.f32.mrf.mxu1 }
 0x139   : > { %v754_v45 = vadd.f32 %v1842_v27, %v753_v43 }
 0x13b   : > { %v805_v48 = vmul.f32 %v1851_v58, %v754_v45  ;;  %vm788_vm8 = vcmp.ge.f32.partialorder %v754_v45, 0.0 }
 0x13d   : > { %v821_v28 = vsel %vm788_vm8, %v754_v45, %v805_v48 }
 0x140   : > { %v755_v49 = vpop.f32.mrf.mxu1 }
 0x141   : > { %v756_v21 = vadd.f32 %v1842_v27, %v755_v49 }
 0x143   : > { %vm789_vm9 = vcmp.ge.f32.partialorder %v756_v21, 0.0  ;;  %v806_v52 = vmul.f32 %v1851_v58, %v756_v21 }
 0x147   : > { %584 = vxpose.xlu0.c.b16.cont [7/8] %v576_v47, 128  ;;  %v773_v47 = vpop.f32.mrf.mxu3 }
 0x148   : > { %v774_v50 = vadd.f32 %v1842_v27, %v773_v47  ;;  %v758_v60 = vpop.f32.mrf.mxu1 }
 0x149   : > { %v759_v0 = vadd.f32 %v1842_v27, %v758_v60 }
 0x14a   : > { %vm796_vm10 = vcmp.ge.f32.partialorder %v774_v50, 0.0 }
 0x14b   : > { %vm790_vm12 = vcmp.ge.f32.partialorder %v759_v0, 0.0 }
 0x14f   : > { %v775_v57 = vpop.f32.mrf.mxu3 }
 0x150   : > { %v776_v59 = vadd.f32 %v1842_v27, %v775_v57 }
 0x152   : > { %vm797_vm11 = vcmp.ge.f32.partialorder %v776_v59, 0.0  ;;  %v814_v62 = vmul.f32 %v1851_v58, %v776_v59 }
 0x154   : > { %v830_v63 = vsel %vm797_vm11, %v776_v59, %v814_v62 }
 0x157   : > { %585 = vxpose.xlu0.c.b16.end [8/8] %v577_v53, 128 }
 0x193   : > { %v586_v54 = vpop.trf.xlu0 }
 0x194   : > { %v602_v55 = vunpack.c.l.b16 %v586_v54  ;;  %v603_v33 = vunpack.c.h.b16 %v586_v54 }
 0x196   : > { %v618_v56 = vpack.c.b16 %v602_v55, %v602_v55  ;;  %v619_v31 = vpack.c.b16 %v603_v33, %v603_v33  ;;  %v813_v55 = vmul.f32 %v1851_v58, %v774_v50  ;;  %v822_v33 = vsel %vm789_vm9, %v756_v21, %v806_v52 }
 0x197   : > { %v1182_v35 = vpack.c.bf16 %v822_v33, %v821_v28 }
 0x198   : > { %650 = vst [vmem:[%s1846_s18] sm:$0xf] %v618_v56  ;;  %v829_v61 = vsel %vm796_vm10, %v774_v50, %v813_v55 }
 0x199   : > { %651 = vst [vmem:[%s1846_s18 + $0x4] sm:$0xf] %v619_v31  ;;  %v1202_v1 = vpack.c.bf16 %v830_v63, %v829_v61 }
 0x19a   : > { %1210 = vst [vmem:[%s1861_s30 + $0x10] sm:$0xff] %v1182_v35  }
 0x19b   : > { %1214 = vst [vmem:[%s1861_s30 + $0x30] sm:$0xff] %v1202_v1  }
 0x1a3   : > { %v587_v2 = vpop.trf.xlu0 }
 0x1a4   : > { %v604_v3 = vunpack.c.l.b16 %v587_v2  ;;  %v605_v4 = vunpack.c.h.b16 %v587_v2  ;;  %v778_v2 = vpop.f32.mrf.mxu3 }
 0x1a5   : > { %v779_v5 = vadd.f32 %v1842_v27, %v778_v2 }
 0x1a6   : > { %v620_v9 = vpack.c.b16 %v604_v3, %v604_v3  ;;  %v621_v11 = vpack.c.b16 %v605_v4, %v605_v4  ;;  %v807_v3 = vmul.f32 %v1851_v58, %v759_v0  ;;  %v760_v4 = vpop.f32.mrf.mxu1 }
 0x1a7   : > { %v761_v6 = vadd.f32 %v1842_v27, %v760_v4  ;;  %v815_v14 = vmul.f32 %v1851_v58, %v779_v5  ;;  %vm798_vm14 = vcmp.ge.f32.partialorder %v779_v5, 0.0 }
 0x1a8   : > { %652 = vst [vmem:[%s1846_s18 + $0x8] sm:$0xf] %v620_v9  ;;  %v823_v8 = vsel %vm790_vm12, %v759_v0, %v807_v3 }
 0x1a9   : > { %653 = vst [vmem:[%s1846_s18 + $0xc] sm:$0xf] %v621_v11  ;;  %vm791_vm13 = vcmp.ge.f32.partialorder %v761_v6, 0.0  ;;  %v808_v9 = vmul.f32 %v1851_v58, %v761_v6  ;;  %v831_v24 = vsel %vm798_vm14, %v779_v5, %v815_v14 }
 0x1ab   : > { %v824_v15 = vsel %vm791_vm13, %v761_v6, %v808_v9 }
 0x1ac   : > { %v1187_v19 = vpack.c.bf16 %v824_v15, %v823_v8  ;;  %v780_v20 = vpop.f32.mrf.mxu3 }
 0x1ad   : > { %v781_v23 = vadd.f32 %v1842_v27, %v780_v20 }
 0x1ae   : > { %1211 = vst [vmem:[%s1861_s30 + $0x18] sm:$0xff] %v1187_v19  }
 0x1af   : > { %vm799_vm15 = vcmp.ge.f32.partialorder %v781_v23, 0.0  ;;  %v816_v25 = vmul.f32 %v1851_v58, %v781_v23 }
 0x1b1   : > { %v832_v26 = vsel %vm799_vm15, %v781_v23, %v816_v25 }
 0x1b2   : > { %v1207_v29 = vpack.c.bf16 %v832_v26, %v831_v24 }
 0x1b3   : > { %v588_v34 = vpop.trf.xlu0 }
 0x1b4   : > { %v606_v36 = vunpack.c.l.b16 %v588_v34  ;;  %v607_v37 = vunpack.c.h.b16 %v588_v34  ;;  %1215 = vst [vmem:[%s1861_s30 + $0x38] sm:$0xff] %v1207_v29  }
 0x1b6   : > { %v622_v40 = vpack.c.b16 %v606_v36, %v606_v36  ;;  %v623_v41 = vpack.c.b16 %v607_v37, %v607_v37 }
 0x1b8   : > { %654 = vst [vmem:[%s1846_s18 + $0x10] sm:$0xf] %v622_v40 }
 0x1b9   : > { %655 = vst [vmem:[%s1846_s18 + $0x14] sm:$0xf] %v623_v41 }
 0x1c3   : > { %v589_v51 = vpop.trf.xlu0 }
 0x1c4   : > { %v608_v53 = vunpack.c.l.b16 %v589_v51  ;;  %v609_v54 = vunpack.c.h.b16 %v589_v51 }
 0x1c6   : > { %v624_v56 = vpack.c.b16 %v608_v53, %v608_v53  ;;  %v625_v31 = vpack.c.b16 %v609_v54, %v609_v54 }
 0x1c8   : > { %656 = vst [vmem:[%s1846_s18 + $0x18] sm:$0xf] %v624_v56 }
 0x1c9   : > { %657 = vst [vmem:[%s1846_s18 + $0x1c] sm:$0xf] %v625_v31 }
 0x1d3   : > { %v590_v7 = vpop.trf.xlu0 }
 0x1d4   : > { %v610_v11 = vunpack.c.l.b16 %v590_v7  ;;  %v611_v12 = vunpack.c.h.b16 %v590_v7 }
 0x1d6   : > { %v626_v17 = vpack.c.b16 %v610_v11, %v610_v11  ;;  %v627_v18 = vpack.c.b16 %v611_v12, %v611_v12 }
 0x1d8   : > { %658 = vst [vmem:[%s1846_s18 + $0x20] sm:$0xf] %v626_v17 }
 0x1d9   : > { %659 = vst [vmem:[%s1846_s18 + $0x24] sm:$0xf] %v627_v18 }
 0x1da   : > { %1470 = shalt.err (!%p1467_p0)
}
 0x1db   : > { %s1574_s16 = smov 64   ;;  %s1575_s30 = smov 4  }
 0x1dc   : > { %1247 = dma.vmem_to_hbm [thread:$0]  (%p1705_p3), %s904_s21, 1024, %s906_s8, %s871_s19, %s1574_s16, %s1574_s16, %s1575_s30  }
 0x1dd   : > { %s883_s20 = scalar_lea.hbm %s1980_s6, %s1167_s13  ;;  %s884_s21 = sshll.u32 %s1846_s18, 4  ;;  %s885_s21 = int_to_ptr.vmem [resolvable:$true] %s884_s21 }
 0x1de   : > { %s886_s8 = sshll.u32 %s883_s20, 4  ;;  %s866_s19 = scalar_lea.sflag [#allocation4], %s1737_s15  ;;  %s887_s8 = int_to_ptr.hbm [resolvable:$true] %s886_s8 }
 0x1df   : > { %s1485_s23 = sshra.s32 %s887_s8, 4  ;;  %s1491_s2 = scalar_lea.hbm %s1980_s6, 128  ;;  %s1486_s23 = int_to_ptr.hbm [resolvable:$true] %s1485_s23 }
 0x1e0   : > { %s1487_s27 = scalar_lea.hbm %s1486_s23, 64  ;;  %p1492_p2 = scmp.lt.s32.totalorder %s1486_s23, %s1980_s6 }
 0x1e1   : > { %p1488_p5 = scmp.ne.s32.totalorder %s1486_s23, %s1487_s27  ;;  %p1493_p1 = scmp.lt.s32.totalorder %s1491_s2, %s1487_s27 }
 0x1e3   : > { %v591_v27 = vpop.trf.xlu0  ;;  %p1489_p7 = pnand %p1488_p5, %p1705_p3  ;;  %p1494_p4 = por %p1493_p1, %p1492_p2 }
 0x1e4   : > { %v612_v58 = vunpack.c.l.b16 %v591_v27  ;;  %v613_v30 = vunpack.c.h.b16 %v591_v27 }
 0x1e5   : > { %p1490_p9 = pneg %p1489_p7 }
 0x1e6   : > { %v628_v32 = vpack.c.b16 %v612_v58, %v612_v58  ;;  %v629_v34 = vpack.c.b16 %v613_v30, %v613_v30 }
 0x1e7   : > { %p1495_p8 = pnand %p1494_p4, %p1490_p9 }
 0x1e8   : > { %660 = vst [vmem:[%s1846_s18 + $0x28] sm:$0xf] %v628_v32 }
 0x1e9   : > { %661 = vst [vmem:[%s1846_s18 + $0x2c] sm:$0xf] %v629_v34 }
 0x1f3   : > { %v592_v36 = vpop.trf.xlu0 }
 0x1f4   : > { %v614_v37 = vunpack.c.l.b16 %v592_v36  ;;  %v615_v10 = vunpack.c.h.b16 %v592_v36 }
 0x1f6   : > { %v630_v16 = vpack.c.b16 %v614_v37, %v614_v37  ;;  %v631_v38 = vpack.c.b16 %v615_v10, %v615_v10 }
 0x1f8   : > { %662 = vst [vmem:[%s1846_s18 + $0x30] sm:$0xf] %v630_v16 }
 0x1f9   : > { %663 = vst [vmem:[%s1846_s18 + $0x34] sm:$0xf] %v631_v38 }
 0x203   : > { %v593_v39 = vpop.trf.xlu0 }
 0x204   : > { %v616_v40 = vunpack.c.l.b16 %v593_v39  ;;  %v617_v41 = vunpack.c.h.b16 %v593_v39 }
 0x206   : > { %v632_v42 = vpack.c.b16 %v616_v40, %v616_v40  ;;  %v633_v43 = vpack.c.b16 %v617_v41, %v617_v41 }
 0x208   : > { %664 = vst [vmem:[%s1846_s18 + $0x38] sm:$0xf] %v632_v42 }
 0x209   : > { %665 = vst [vmem:[%s1846_s18 + $0x3c] sm:$0xf] %v633_v43 }
 0x20a   : > { %1498 = shalt.err (!%p1495_p8)
}
 0x20b   : > { %1246 = dma.vmem_to_hbm [thread:$0]  (%p1705_p3), %s885_s21, 1024, %s887_s8, %s866_s19, %s1574_s16, %s1574_s16, %s1575_s30  }
 0x20c PF: > { %s920_s18 = sand.u32 1, %s1545_s24   ;;  %p1265_p10 = pnand %p1065_p11, %p1665_p6 }
 0x20d   : > { %s921_s11 = scalar_lea.sflag [#allocation4], %s920_s18 }
 0x20e   : > { %p1266_p12 = pneg %p1265_p10 }
 0x210   : > { %1536 = dma.done.wait (%p1266_p12), %s921_s11, 1024  }
 0x211   : > { %1538 = vsyncadd (%p1266_p12), %s921_s11, 4294966272  ;;  %s931_s12 = scalar_lea.sflag [#allocation12], %s920_s18 }
 0x212   : > { %1540 = dma.done.wait (%p1266_p12), %s931_s12, 1024  }
 0x213   : > { %1542 = vsyncadd (%p1266_p12), %s931_s12, 4294966272  ;;  %s29_s29 = sadd.s32 1, %s1565_s29   ;;  %s2001_s22 = sld [smem:[#allocation19_spill]] }
 0x214   : > { %p26_p13 = scmp.ge.s32.totalorder %s29_s29, 4   ;;  %s2002_s24 = smov %s1549_s25 }
 0x215   : > { %s2003_s25 = smov %s1553_s26  ;;  %s2004_s26 = smov %s1721_s10 }
 0x216   : > { %s2005_s27 = smov %s1561_s28  ;;  %28 = sbr.rel (!%p26_p13) target bundleno = 14 (0xe), region = 119 }
 0x219   : > { %s2006_s28 = smov %s2001_s22 }
 0x21b   :  { %937 = vsyncpa [#allocation3], 1 }
 0x21c   :  { %939 = vsyncpa [#allocation3 + $0x1], 1 }
 0x21d   :  { %940 = vsyncpa [#allocation8], 1 }
 0x21e   :  { %941 = vsyncpa [#allocation4], 1 }
 0x21f   :  { %943 = vsyncpa [#allocation4 + $0x1], 1 }
 0x220   :  { %944 = vsyncpa [#allocation12], 1 }
 0x221   :  { %946 = vsyncpa [#allocation12 + $0x1], 1 }
 0x222   :  { %947 = vsyncpa [#allocation5], 1 }
 0x223   :  { %949 = vsyncpa [#allocation5 + $0x1], 1 }

</bundles_post_ra>
